<compile_context>
chip_gen: v7x
topology: tpu7x:2x2x1
jax: 0.10.0
libtpu: 0.0.40
codegen_flags: <defaults>
</compile_context>

<pallas_src>
import functools

import jax
import jax.numpy as jnp
from jax import lax
from jax.experimental import pallas as pl
from jax.experimental.pallas import tpu as pltpu


_VMEM_LIMIT = 32 * 1024 * 1024   # explicit headroom; safe on v5e/v6e/v7x


# --------------------------------------------------------------------------
# Pallas kernels — one fused pallas_call per layer, whole layer in VMEM
# --------------------------------------------------------------------------

def _conv_act_kernel(w_ref, p_ref, o_ref, *, alpha):
    """o[Cout, M] = leaky_relu(W @ P, alpha). No bias (Conv2d bias=False)."""
    z = jnp.dot(w_ref[...], p_ref[...], preferred_element_type=jnp.float32)
    o_ref[...] = jnp.where(z >= 0.0, z, alpha * z).astype(o_ref.dtype)


def conv_act(wmat, patches_t, alpha, out_dtype, num_lane_tiles=1):
    """wmat: [Cout, K] bf16, patches_t: [K, M] bf16 -> [Cout, M].

    M (lanes) is optionally tiled on a parallel grid axis so v7x's two
    TensorCores each take half the columns (no-op on v5e/v6e).
    """
    cout, k = wmat.shape
    m = patches_t.shape[1]
    nt = num_lane_tiles if (num_lane_tiles > 1
                            and m % (num_lane_tiles * 128) == 0) else 1
    tm = m // nt
    kernel = functools.partial(_conv_act_kernel, alpha=float(alpha))
    return pl.pallas_call(
        kernel,
        out_shape=jax.ShapeDtypeStruct((cout, m), out_dtype),
        grid_spec=pltpu.PrefetchScalarGridSpec(
            num_scalar_prefetch=0,
            grid=(nt,),
            in_specs=[
                pl.BlockSpec((cout, k), lambda i: (0, 0)),
                pl.BlockSpec((k, tm), lambda i: (0, i)),
            ],
            out_specs=pl.BlockSpec((cout, tm), lambda i: (0, i)),
        ),
        compiler_params=pltpu.CompilerParams(
            dimension_semantics=("parallel",),
            vmem_limit_bytes=_VMEM_LIMIT),
    )(wmat, patches_t)


def _conv_bn_act_kernel(w_ref, p_ref, g_ref, b_ref, o_ref, *, alpha, eps):
    """Fused conv-matmul + BatchNorm(training, batch stats) + LeakyReLU.

    z[Cout, M] never leaves VMEM; per-channel stats are axis=-1 reductions
    over exactly M = N*Ho*Wo columns (no padding -> no masking needed).
    """
    z = jnp.dot(w_ref[...], p_ref[...], preferred_element_type=jnp.float32)
    inv_m = 1.0 / z.shape[1]
    mean = jnp.sum(z, axis=1, keepdims=True) * inv_m            # [Cout, 1]
    cen = z - mean
    var = jnp.sum(cen * cen, axis=1, keepdims=True) * inv_m     # biased var
    scale = g_ref[...] * lax.rsqrt(var + eps)                   # EUP rsqrt
    shift = b_ref[...] - mean * scale
    y = z * scale + shift
    o_ref[...] = jnp.where(y >= 0.0, y, alpha * y).astype(o_ref.dtype)


def conv_bn_act(wmat, patches_t, gamma, beta, alpha, eps, out_dtype):
    cout, k = wmat.shape
    m = patches_t.shape[1]
    kernel = functools.partial(_conv_bn_act_kernel,
                               alpha=float(alpha), eps=float(eps))
    return pl.pallas_call(
        kernel,
        out_shape=jax.ShapeDtypeStruct((cout, m), out_dtype),
        grid_spec=pltpu.PrefetchScalarGridSpec(
            num_scalar_prefetch=0,
            grid=(1,),
            in_specs=[
                pl.BlockSpec((cout, k), lambda i: (0, 0)),
                pl.BlockSpec((k, m), lambda i: (0, 0)),
                pl.BlockSpec((cout, 1), lambda i: (0, 0)),
                pl.BlockSpec((cout, 1), lambda i: (0, 0)),
            ],
            out_specs=pl.BlockSpec((cout, m), lambda i: (0, 0)),
        ),
        compiler_params=pltpu.CompilerParams(
            dimension_semantics=("arbitrary",),
            vmem_limit_bytes=_VMEM_LIMIT),
    )(wmat, patches_t, gamma, beta)


def _matmul_bias_kernel(w_ref, p_ref, b_ref, o_ref):
    """o[nz, N] = W_fused @ P + b (fp32, no activation) — conv5 + Linear."""
    z = jnp.dot(w_ref[...], p_ref[...], preferred_element_type=jnp.float32)
    o_ref[...] = (z + b_ref[...]).astype(o_ref.dtype)


def matmul_bias(wmat, patches_t, bias, out_dtype):
    nz, k = wmat.shape
    m = patches_t.shape[1]
    return pl.pallas_call(
        _matmul_bias_kernel,
        out_shape=jax.ShapeDtypeStruct((nz, m), out_dtype),
        grid_spec=pltpu.PrefetchScalarGridSpec(
            num_scalar_prefetch=0,
            grid=(1,),
            in_specs=[
                pl.BlockSpec((nz, k), lambda i: (0, 0)),
                pl.BlockSpec((k, m), lambda i: (0, 0)),
                pl.BlockSpec((nz, 1), lambda i: (0, 0)),
            ],
            out_specs=pl.BlockSpec((nz, m), lambda i: (0, 0)),
        ),
        compiler_params=pltpu.CompilerParams(
            dimension_semantics=("arbitrary",),
            vmem_limit_bytes=_VMEM_LIMIT),
    )(wmat, patches_t, bias)


# --------------------------------------------------------------------------
# Glue: channel-major im2col (no large transposes), per-layer wrapper
# --------------------------------------------------------------------------

def im2col_cm(x, kh, kw, stride, pad):
    """x: [C, N, H, W] -> PatchesT [C*kh*kw, N*Ho*Wo].

    K feature order is (c, i, j) — exactly PyTorch's w.reshape(Cout, -1)
    flattening — so no weight permute and no activation transpose is needed.
    """
    c, n, h, w = x.shape
    xp = jnp.pad(x, ((0, 0), (0, 0), (pad, pad), (pad, pad)))
    ho = (h + 2 * pad - kh) // stride + 1
    wo = (w + 2 * pad - kw) // stride + 1
    cols = []
    for i in range(kh):
        for j in range(kw):
            cols.append(xp[:, :, i:i + stride * ho:stride,
                              j:j + stride * wo:stride])
    cols = jnp.stack(cols, axis=1)                    # [C, kh*kw, N, Ho, Wo]
    return cols.reshape(c * kh * kw, n * ho * wo), (n, ho, wo)


def conv_block(x_cm, wmat, kh, kw, stride, pad, alpha, bn, out_dtype,
               num_lane_tiles=1):
    """Conv2d(bias=False) [+ BatchNorm2d(training)] + LeakyReLU(alpha), fused.

    x_cm: [Cin, N, H, W] channel-major; returns [Cout, N, Ho, Wo].
    """
    patches_t, (n, ho, wo) = im2col_cm(x_cm, kh, kw, stride, pad)
    patches_t = patches_t.astype(wmat.dtype)
    cout = wmat.shape[0]
    if bn is None:
        y = conv_act(wmat, patches_t, alpha, out_dtype, num_lane_tiles)
    else:
        gamma, beta, eps = bn
        y = conv_bn_act(wmat, patches_t, gamma, beta, alpha, eps, out_dtype)
    return y.reshape(cout, n, ho, wo)


# --------------------------------------------------------------------------
# DENEncoder forward
# --------------------------------------------------------------------------

def den_encoder_forward(x_nchw, params):
    eps = 1e-5
    # NCHW -> channel-major [C, N, H, W]; MXU inputs bf16, accum/BN math f32.
    x = jnp.transpose(x_nchw, (1, 0, 2, 3)).astype(jnp.bfloat16)

    # conv1 + LeakyReLU (no BN): M tiled on a parallel axis (v7x dual-TC)
    x = conv_block(x, params["w1m"], 4, 4, 2, 1, 0.2, None,
                   jnp.bfloat16, num_lane_tiles=2)
    # conv2..4 + BN(training) + LeakyReLU, fully fused per layer
    x = conv_block(x, params["w2m"], 4, 4, 2, 1, 0.2,
                   (params["g2"], params["b2"], eps), jnp.bfloat16)
    x = conv_block(x, params["w3m"], 4, 4, 2, 1, 0.2,
                   (params["g3"], params["b3"], eps), jnp.bfloat16)
    x = conv_block(x, params["w4m"], 4, 4, 2, 1, 0.2,
                   (params["g4"], params["b4"], eps), jnp.float32)

    # conv5 (no act/BN) + Flatten + Linear fused into one fp32 matmul kernel
    # (W_fused precomputed at init).  4x4 valid conv -> Ho = Wo = 1.
    p5, _ = im2col_cm(x, 4, 4, 1, 0)                          # [1024, N] f32
    y = matmul_bias(params["wfm"], p5, params["blm"], jnp.float32)  # [nz, N]
    return y.T                                                 # [N, nz]


def init_params(key, nc=1, ndf=8, nz=16):
    """All weight matrices (and their bf16 casts) and the fused conv5+Linear
    weight are precomputed here, off the forward hot path."""
    ks = jax.random.split(key, 8)
    w1 = 0.05 * jax.random.normal(ks[0], (ndf, nc, 4, 4), jnp.float32)
    w2 = 0.05 * jax.random.normal(ks[1], (ndf * 2, ndf, 4, 4), jnp.float32)
    w3 = 0.05 * jax.random.normal(ks[2], (ndf * 4, ndf * 2, 4, 4), jnp.float32)
    w4 = 0.05 * jax.random.normal(ks[3], (ndf * 8, ndf * 4, 4, 4), jnp.float32)
    w5 = 0.05 * jax.random.normal(ks[4], (64, ndf * 8, 4, 4), jnp.float32)
    wl = 0.05 * jax.random.normal(ks[5], (nz, 64), jnp.float32)
    bl = 0.05 * jax.random.normal(ks[6], (nz,), jnp.float32)

    # Exact algebraic fusion of conv5 + Linear (no nonlinearity in between):
    # out[n, z] = sum_k (wl @ w5_mat)[z, k] * patches5[k, n] + bl[z]
    w_fused = jnp.dot(wl, w5.reshape(64, ndf * 8 * 16))        # [nz, K5] f32

    return {
        # conv weight matrices in native PyTorch flattening (Cout, Cin*kh*kw)
        "w1m": w1.reshape(ndf, nc * 16).astype(jnp.bfloat16),
        "w2m": w2.reshape(ndf * 2, ndf * 16).astype(jnp.bfloat16),
        "w3m": w3.reshape(ndf * 4, ndf * 2 * 16).astype(jnp.bfloat16),
        "w4m": w4.reshape(ndf * 8, ndf * 4 * 16).astype(jnp.bfloat16),
        "wfm": w_fused.astype(jnp.float32),                    # keep fp32
        "blm": bl.reshape(nz, 1).astype(jnp.float32),
        # BatchNorm affine params (PyTorch default init: gamma=1, beta=0)
        "g2": jnp.ones((ndf * 2, 1), jnp.float32),
        "b2": jnp.zeros((ndf * 2, 1), jnp.float32),
        "g3": jnp.ones((ndf * 4, 1), jnp.float32),
        "b3": jnp.zeros((ndf * 4, 1), jnp.float32),
        "g4": jnp.ones((ndf * 8, 1), jnp.float32),
        "b4": jnp.zeros((ndf * 8, 1), jnp.float32),
    }


if __name__ == "__main__":
    key = jax.random.PRNGKey(0)
    k_x, k_p = jax.random.split(key)

    # Small but architecture-consistent: the final 4x4/s1/p0 conv + Linear(64, nz)
    # requires a 64x64 spatial input (64 -> 32 -> 16 -> 8 -> 4 -> 1).
    nz, ndf = 16, 8
    x = jax.random.normal(k_x, (2, 1, 64, 64), jnp.float32)
    params = init_params(k_p, nc=1, ndf=ndf, nz=nz)

    fwd = jax.jit(den_encoder_forward)
    out = fwd(x, params)
    out = jax.block_until_ready(out)

    assert out.shape == (2, nz), out.shape
    assert jnp.all(jnp.isfinite(out))
    print("KERNEL_OK")
</pallas_src>

<mosaic_0001>
module attributes {stable_mosaic.version = 11 : i64} {
  func.func @_conv_act_kernel(%arg0: i32, %arg1: memref<8x16xbf16, #tpu.memory_space<vmem>>, %arg2: memref<16x1024xbf16, #tpu.memory_space<vmem>>, %arg3: memref<8x1024xbf16, #tpu.memory_space<vmem>>) attributes {dimension_semantics = [#tpu.dimension_semantics<parallel>], iteration_bounds = array<i64: 2>, scalar_prefetch = 0 : i64, scratch_operands = 0 : i64, tpu.core_type = #tpu.core_type<tc>, window_params = [{pipeline_mode = #tpu.pipeline_mode<synchronous>, transform_indices = @transform_0, window_bounds = array<i64: 8, 16>}, {transform_indices = @transform_1, window_bounds = array<i64: 16, 1024>}, {transform_indices = @transform_2, window_bounds = array<i64: 8, 1024>}]} {
    %c0 = arith.constant 0 : index
    %c0_0 = arith.constant 0 : index
    %0 = vector.load %arg1[%c0, %c0_0] : memref<8x16xbf16, #tpu.memory_space<vmem>>, vector<8x16xbf16>
    %c0_1 = arith.constant 0 : index
    %c0_2 = arith.constant 0 : index
    %1 = vector.load %arg2[%c0_1, %c0_2] : memref<16x1024xbf16, #tpu.memory_space<vmem>>, vector<16x1024xbf16>
    %cst = arith.constant dense<0.000000e+00> : vector<8x1024xf32>
    %2 = tpu.matmul %0, %1, %cst {dimension_numbers = #tpu.dot_dimension_numbers<[1], [0], [0], [1], [0, 0, 1, 1], [], []>} : vector<8x16xbf16>, vector<16x1024xbf16>, vector<8x1024xf32> -> vector<8x1024xf32>
    %cst_3 = arith.constant 0.000000e+00 : f32
    %3 = vector.broadcast %cst_3 : f32 to vector<8x1024xf32>
    %4 = arith.cmpf oge, %2, %3 : vector<8x1024xf32>
    %cst_4 = arith.constant 2.000000e-01 : f32
    %5 = vector.broadcast %cst_4 : f32 to vector<8x1024xf32>
    %6 = arith.mulf %5, %2 : vector<8x1024xf32>
    %7 = arith.select %4, %2, %6 : vector<8x1024xi1>, vector<8x1024xf32>
    %8 = arith.truncf %7 : vector<8x1024xf32> to vector<8x1024xbf16>
    %c0_5 = arith.constant 0 : index
    %c0_6 = arith.constant 0 : index
    %9 = vector.load %arg3[%c0_5, %c0_6] : memref<8x1024xbf16, #tpu.memory_space<vmem>>, vector<8x1024xbf16>
    tpu.vector_store %arg3[%c0_5, %c0_6], %8 {strides = array<i32>} : memref<8x1024xbf16, #tpu.memory_space<vmem>>, vector<8x1024xbf16>,
    return
  }
  func.func @transform_0(%arg0: i32) -> (i32, i32) {
    %c0_i32 = arith.constant 0 : i32
    %c0_i32_0 = arith.constant 0 : i32
    %c0_i32_1 = arith.constant 0 : i32
    return %c0_i32, %c0_i32_0 : i32, i32
  }
  func.func @transform_1(%arg0: i32) -> (i32, i32) {
    %c0_i32 = arith.constant 0 : i32
    %c0_i32_0 = arith.constant 0 : i32
    return %c0_i32, %arg0 : i32, i32
  }
  func.func @transform_2(%arg0: i32) -> (i32, i32) {
    %c0_i32 = arith.constant 0 : i32
    %c0_i32_0 = arith.constant 0 : i32
    return %c0_i32, %arg0 : i32, i32
  }
}

module attributes {stable_mosaic.version = 11 : i64} {
  func.func @_conv_bn_act_kernel(%arg0: i32, %arg1: memref<16x128xbf16, #tpu.memory_space<vmem>>, %arg2: memref<128x512xbf16, #tpu.memory_space<vmem>>, %arg3: memref<16x1xf32, #tpu.memory_space<vmem>>, %arg4: memref<16x1xf32, #tpu.memory_space<vmem>>, %arg5: memref<16x512xbf16, #tpu.memory_space<vmem>>) attributes {dimension_semantics = [#tpu.dimension_semantics<arbitrary>], iteration_bounds = array<i64: 1>, scalar_prefetch = 0 : i64, scratch_operands = 0 : i64, tpu.core_type = #tpu.core_type<tc>, window_params = [{pipeline_mode = #tpu.pipeline_mode<synchronous>, transform_indices = @transform_0, window_bounds = array<i64: 16, 128>}, {pipeline_mode = #tpu.pipeline_mode<synchronous>, transform_indices = @transform_1, window_bounds = array<i64: 128, 512>}, {pipeline_mode = #tpu.pipeline_mode<synchronous>, transform_indices = @transform_2, window_bounds = array<i64: 16, 1>}, {pipeline_mode = #tpu.pipeline_mode<synchronous>, transform_indices = @transform_3, window_bounds = array<i64: 16, 1>}, {pipeline_mode = #tpu.pipeline_mode<synchronous>, transform_indices = @transform_4, window_bounds = array<i64: 16, 512>}]} {
    %c0 = arith.constant 0 : index
    %c0_0 = arith.constant 0 : index
    %0 = vector.load %arg1[%c0, %c0_0] : memref<16x128xbf16, #tpu.memory_space<vmem>>, vector<16x128xbf16>
    %c0_1 = arith.constant 0 : index
    %c0_2 = arith.constant 0 : index
    %1 = vector.load %arg2[%c0_1, %c0_2] : memref<128x512xbf16, #tpu.memory_space<vmem>>, vector<128x512xbf16>
    %cst = arith.constant dense<0.000000e+00> : vector<16x512xf32>
    %2 = tpu.matmul %0, %1, %cst {dimension_numbers = #tpu.dot_dimension_numbers<[1], [0], [0], [1], [0, 0, 1, 1], [], []>} : vector<16x128xbf16>, vector<128x512xbf16>, vector<16x512xf32> -> vector<16x512xf32>
    %cst_3 = arith.constant dense<0.000000e+00> : vector<16xf32>
    %3 = vector.multi_reduction <add>, %2, %cst_3 [1] : vector<16x512xf32> to vector<16xf32>
    %4 = vector.shape_cast %3 : vector<16xf32> to vector<16x1xf32>
    %cst_4 = arith.constant 0.001953125 : f32
    %5 = vector.broadcast %cst_4 : f32 to vector<16x1xf32>
    %6 = arith.mulf %4, %5 : vector<16x1xf32>
    %7 = vector.broadcast %6 : vector<16x1xf32> to vector<16x512xf32>
    %8 = arith.subf %2, %7 : vector<16x512xf32>
    %9 = arith.mulf %8, %8 : vector<16x512xf32>
    %cst_5 = arith.constant dense<0.000000e+00> : vector<16xf32>
    %10 = vector.multi_reduction <add>, %9, %cst_5 [1] : vector<16x512xf32> to vector<16xf32>
    %11 = vector.shape_cast %10 : vector<16xf32> to vector<16x1xf32>
    %cst_6 = arith.constant 0.001953125 : f32
    %12 = vector.broadcast %cst_6 : f32 to vector<16x1xf32>
    %13 = arith.mulf %11, %12 : vector<16x1xf32>
    %c0_7 = arith.constant 0 : index
    %c0_8 = arith.constant 0 : index
    %14 = vector.load %arg3[%c0_7, %c0_8] : memref<16x1xf32, #tpu.memory_space<vmem>>, vector<16x1xf32>
    %cst_9 = arith.constant 9.99999974E-6 : f32
    %15 = vector.broadcast %cst_9 : f32 to vector<16x1xf32>
    %16 = arith.addf %13, %15 : vector<16x1xf32>
    %17 = math.rsqrt %16 : vector<16x1xf32>
    %18 = arith.mulf %14, %17 : vector<16x1xf32>
    %c0_10 = arith.constant 0 : index
    %c0_11 = arith.constant 0 : index
    %19 = vector.load %arg4[%c0_10, %c0_11] : memref<16x1xf32, #tpu.memory_space<vmem>>, vector<16x1xf32>
    %20 = arith.mulf %6, %18 : vector<16x1xf32>
    %21 = arith.subf %19, %20 : vector<16x1xf32>
    %22 = vector.broadcast %18 : vector<16x1xf32> to vector<16x512xf32>
    %23 = arith.mulf %2, %22 : vector<16x512xf32>
    %24 = vector.broadcast %21 : vector<16x1xf32> to vector<16x512xf32>
    %25 = arith.addf %23, %24 : vector<16x512xf32>
    %cst_12 = arith.constant 0.000000e+00 : f32
    %26 = vector.broadcast %cst_12 : f32 to vector<16x512xf32>
    %27 = arith.cmpf oge, %25, %26 : vector<16x512xf32>
    %cst_13 = arith.constant 2.000000e-01 : f32
    %28 = vector.broadcast %cst_13 : f32 to vector<16x512xf32>
    %29 = arith.mulf %28, %25 : vector<16x512xf32>
    %30 = arith.select %27, %25, %29 : vector<16x512xi1>, vector<16x512xf32>
    %31 = arith.truncf %30 : vector<16x512xf32> to vector<16x512xbf16>
    %c0_14 = arith.constant 0 : index
    %c0_15 = arith.constant 0 : index
    %32 = vector.load %arg5[%c0_14, %c0_15] : memref<16x512xbf16, #tpu.memory_space<vmem>>, vector<16x512xbf16>
    tpu.vector_store %arg5[%c0_14, %c0_15], %31 {strides = array<i32>} : memref<16x512xbf16, #tpu.memory_space<vmem>>, vector<16x512xbf16>,
    return
  }
  func.func @transform_0(%arg0: i32) -> (i32, i32) {
    %c0_i32 = arith.constant 0 : i32
    %c0_i32_0 = arith.constant 0 : i32
    %c0_i32_1 = arith.constant 0 : i32
    return %c0_i32, %c0_i32_0 : i32, i32
  }
  func.func @transform_1(%arg0: i32) -> (i32, i32) {
    %c0_i32 = arith.constant 0 : i32
    %c0_i32_0 = arith.constant 0 : i32
    %c0_i32_1 = arith.constant 0 : i32
    return %c0_i32, %c0_i32_0 : i32, i32
  }
  func.func @transform_2(%arg0: i32) -> (i32, i32) {
    %c0_i32 = arith.constant 0 : i32
    %c0_i32_0 = arith.constant 0 : i32
    %c0_i32_1 = arith.constant 0 : i32
    return %c0_i32, %c0_i32_0 : i32, i32
  }
  func.func @transform_3(%arg0: i32) -> (i32, i32) {
    %c0_i32 = arith.constant 0 : i32
    %c0_i32_0 = arith.constant 0 : i32
    %c0_i32_1 = arith.constant 0 : i32
    return %c0_i32, %c0_i32_0 : i32, i32
  }
  func.func @transform_4(%arg0: i32) -> (i32, i32) {
    %c0_i32 = arith.constant 0 : i32
    %c0_i32_0 = arith.constant 0 : i32
    %c0_i32_1 = arith.constant 0 : i32
    return %c0_i32, %c0_i32_0 : i32, i32
  }
}

module attributes {stable_mosaic.version = 11 : i64} {
  func.func @_conv_bn_act_kernel(%arg0: i32, %arg1: memref<32x256xbf16, #tpu.memory_space<vmem>>, %arg2: memref<256x128xbf16, #tpu.memory_space<vmem>>, %arg3: memref<32x1xf32, #tpu.memory_space<vmem>>, %arg4: memref<32x1xf32, #tpu.memory_space<vmem>>, %arg5: memref<32x128xbf16, #tpu.memory_space<vmem>>) attributes {dimension_semantics = [#tpu.dimension_semantics<arbitrary>], iteration_bounds = array<i64: 1>, scalar_prefetch = 0 : i64, scratch_operands = 0 : i64, tpu.core_type = #tpu.core_type<tc>, window_params = [{pipeline_mode = #tpu.pipeline_mode<synchronous>, transform_indices = @transform_0, window_bounds = array<i64: 32, 256>}, {pipeline_mode = #tpu.pipeline_mode<synchronous>, transform_indices = @transform_1, window_bounds = array<i64: 256, 128>}, {pipeline_mode = #tpu.pipeline_mode<synchronous>, transform_indices = @transform_2, window_bounds = array<i64: 32, 1>}, {pipeline_mode = #tpu.pipeline_mode<synchronous>, transform_indices = @transform_3, window_bounds = array<i64: 32, 1>}, {pipeline_mode = #tpu.pipeline_mode<synchronous>, transform_indices = @transform_4, window_bounds = array<i64: 32, 128>}]} {
    %c0 = arith.constant 0 : index
    %c0_0 = arith.constant 0 : index
    %0 = vector.load %arg1[%c0, %c0_0] : memref<32x256xbf16, #tpu.memory_space<vmem>>, vector<32x256xbf16>
    %c0_1 = arith.constant 0 : index
    %c0_2 = arith.constant 0 : index
    %1 = vector.load %arg2[%c0_1, %c0_2] : memref<256x128xbf16, #tpu.memory_space<vmem>>, vector<256x128xbf16>
    %cst = arith.constant dense<0.000000e+00> : vector<32x128xf32>
    %2 = tpu.matmul %0, %1, %cst {dimension_numbers = #tpu.dot_dimension_numbers<[1], [0], [0], [1], [0, 0, 1, 1], [], []>} : vector<32x256xbf16>, vector<256x128xbf16>, vector<32x128xf32> -> vector<32x128xf32>
    %cst_3 = arith.constant dense<0.000000e+00> : vector<32xf32>
    %3 = vector.multi_reduction <add>, %2, %cst_3 [1] : vector<32x128xf32> to vector<32xf32>
    %4 = vector.shape_cast %3 : vector<32xf32> to vector<32x1xf32>
    %cst_4 = arith.constant 7.812500e-03 : f32
    %5 = vector.broadcast %cst_4 : f32 to vector<32x1xf32>
    %6 = arith.mulf %4, %5 : vector<32x1xf32>
    %7 = vector.broadcast %6 : vector<32x1xf32> to vector<32x128xf32>
    %8 = arith.subf %2, %7 : vector<32x128xf32>
    %9 = arith.mulf %8, %8 : vector<32x128xf32>
    %cst_5 = arith.constant dense<0.000000e+00> : vector<32xf32>
    %10 = vector.multi_reduction <add>, %9, %cst_5 [1] : vector<32x128xf32> to vector<32xf32>
    %11 = vector.shape_cast %10 : vector<32xf32> to vector<32x1xf32>
    %cst_6 = arith.constant 7.812500e-03 : f32
    %12 = vector.broadcast %cst_6 : f32 to vector<32x1xf32>
    %13 = arith.mulf %11, %12 : vector<32x1xf32>
    %c0_7 = arith.constant 0 : index
    %c0_8 = arith.constant 0 : index
    %14 = vector.load %arg3[%c0_7, %c0_8] : memref<32x1xf32, #tpu.memory_space<vmem>>, vector<32x1xf32>
    %cst_9 = arith.constant 9.99999974E-6 : f32
    %15 = vector.broadcast %cst_9 : f32 to vector<32x1xf32>
    %16 = arith.addf %13, %15 : vector<32x1xf32>
    %17 = math.rsqrt %16 : vector<32x1xf32>
    %18 = arith.mulf %14, %17 : vector<32x1xf32>
    %c0_10 = arith.constant 0 : index
    %c0_11 = arith.constant 0 : index
    %19 = vector.load %arg4[%c0_10, %c0_11] : memref<32x1xf32, #tpu.memory_space<vmem>>, vector<32x1xf32>
    %20 = arith.mulf %6, %18 : vector<32x1xf32>
    %21 = arith.subf %19, %20 : vector<32x1xf32>
    %22 = vector.broadcast %18 : vector<32x1xf32> to vector<32x128xf32>
    %23 = arith.mulf %2, %22 : vector<32x128xf32>
    %24 = vector.broadcast %21 : vector<32x1xf32> to vector<32x128xf32>
    %25 = arith.addf %23, %24 : vector<32x128xf32>
    %cst_12 = arith.constant 0.000000e+00 : f32
    %26 = vector.broadcast %cst_12 : f32 to vector<32x128xf32>
    %27 = arith.cmpf oge, %25, %26 : vector<32x128xf32>
    %cst_13 = arith.constant 2.000000e-01 : f32
    %28 = vector.broadcast %cst_13 : f32 to vector<32x128xf32>
    %29 = arith.mulf %28, %25 : vector<32x128xf32>
    %30 = arith.select %27, %25, %29 : vector<32x128xi1>, vector<32x128xf32>
    %31 = arith.truncf %30 : vector<32x128xf32> to vector<32x128xbf16>
    %c0_14 = arith.constant 0 : index
    %c0_15 = arith.constant 0 : index
    %32 = vector.load %arg5[%c0_14, %c0_15] : memref<32x128xbf16, #tpu.memory_space<vmem>>, vector<32x128xbf16>
    tpu.vector_store %arg5[%c0_14, %c0_15], %31 {strides = array<i32>} : memref<32x128xbf16, #tpu.memory_space<vmem>>, vector<32x128xbf16>,
    return
  }
  func.func @transform_0(%arg0: i32) -> (i32, i32) {
    %c0_i32 = arith.constant 0 : i32
    %c0_i32_0 = arith.constant 0 : i32
    %c0_i32_1 = arith.constant 0 : i32
    return %c0_i32, %c0_i32_0 : i32, i32
  }
  func.func @transform_1(%arg0: i32) -> (i32, i32) {
    %c0_i32 = arith.constant 0 : i32
    %c0_i32_0 = arith.constant 0 : i32
    %c0_i32_1 = arith.constant 0 : i32
    return %c0_i32, %c0_i32_0 : i32, i32
  }
  func.func @transform_2(%arg0: i32) -> (i32, i32) {
    %c0_i32 = arith.constant 0 : i32
    %c0_i32_0 = arith.constant 0 : i32
    %c0_i32_1 = arith.constant 0 : i32
    return %c0_i32, %c0_i32_0 : i32, i32
  }
  func.func @transform_3(%arg0: i32) -> (i32, i32) {
    %c0_i32 = arith.constant 0 : i32
    %c0_i32_0 = arith.constant 0 : i32
    %c0_i32_1 = arith.constant 0 : i32
    return %c0_i32, %c0_i32_0 : i32, i32
  }
  func.func @transform_4(%arg0: i32) -> (i32, i32) {
    %c0_i32 = arith.constant 0 : i32
    %c0_i32_0 = arith.constant 0 : i32
    %c0_i32_1 = arith.constant 0 : i32
    return %c0_i32, %c0_i32_0 : i32, i32
  }
}

module attributes {stable_mosaic.version = 11 : i64} {
  func.func @_conv_bn_act_kernel(%arg0: i32, %arg1: memref<64x512xbf16, #tpu.memory_space<vmem>>, %arg2: memref<512x32xbf16, #tpu.memory_space<vmem>>, %arg3: memref<64x1xf32, #tpu.memory_space<vmem>>, %arg4: memref<64x1xf32, #tpu.memory_space<vmem>>, %arg5: memref<64x32xf32, #tpu.memory_space<vmem>>) attributes {dimension_semantics = [#tpu.dimension_semantics<arbitrary>], iteration_bounds = array<i64: 1>, scalar_prefetch = 0 : i64, scratch_operands = 0 : i64, tpu.core_type = #tpu.core_type<tc>, window_params = [{pipeline_mode = #tpu.pipeline_mode<synchronous>, transform_indices = @transform_0, window_bounds = array<i64: 64, 512>}, {pipeline_mode = #tpu.pipeline_mode<synchronous>, transform_indices = @transform_1, window_bounds = array<i64: 512, 32>}, {pipeline_mode = #tpu.pipeline_mode<synchronous>, transform_indices = @transform_2, window_bounds = array<i64: 64, 1>}, {pipeline_mode = #tpu.pipeline_mode<synchronous>, transform_indices = @transform_3, window_bounds = array<i64: 64, 1>}, {pipeline_mode = #tpu.pipeline_mode<synchronous>, transform_indices = @transform_4, window_bounds = array<i64: 64, 32>}]} {
    %c0 = arith.constant 0 : index
    %c0_0 = arith.constant 0 : index
    %0 = vector.load %arg1[%c0, %c0_0] : memref<64x512xbf16, #tpu.memory_space<vmem>>, vector<64x512xbf16>
    %c0_1 = arith.constant 0 : index
    %c0_2 = arith.constant 0 : index
    %1 = vector.load %arg2[%c0_1, %c0_2] : memref<512x32xbf16, #tpu.memory_space<vmem>>, vector<512x32xbf16>
    %cst = arith.constant dense<0.000000e+00> : vector<64x32xf32>
    %2 = tpu.matmul %0, %1, %cst {dimension_numbers = #tpu.dot_dimension_numbers<[1], [0], [0], [1], [0, 0, 1, 1], [], []>} : vector<64x512xbf16>, vector<512x32xbf16>, vector<64x32xf32> -> vector<64x32xf32>
    %cst_3 = arith.constant dense<0.000000e+00> : vector<64xf32>
    %3 = vector.multi_reduction <add>, %2, %cst_3 [1] : vector<64x32xf32> to vector<64xf32>
    %4 = vector.shape_cast %3 : vector<64xf32> to vector<64x1xf32>
    %cst_4 = arith.constant 3.125000e-02 : f32
    %5 = vector.broadcast %cst_4 : f32 to vector<64x1xf32>
    %6 = arith.mulf %4, %5 : vector<64x1xf32>
    %7 = vector.broadcast %6 : vector<64x1xf32> to vector<64x32xf32>
    %8 = arith.subf %2, %7 : vector<64x32xf32>
    %9 = arith.mulf %8, %8 : vector<64x32xf32>
    %cst_5 = arith.constant dense<0.000000e+00> : vector<64xf32>
    %10 = vector.multi_reduction <add>, %9, %cst_5 [1] : vector<64x32xf32> to vector<64xf32>
    %11 = vector.shape_cast %10 : vector<64xf32> to vector<64x1xf32>
    %cst_6 = arith.constant 3.125000e-02 : f32
    %12 = vector.broadcast %cst_6 : f32 to vector<64x1xf32>
    %13 = arith.mulf %11, %12 : vector<64x1xf32>
    %c0_7 = arith.constant 0 : index
    %c0_8 = arith.constant 0 : index
    %14 = vector.load %arg3[%c0_7, %c0_8] : memref<64x1xf32, #tpu.memory_space<vmem>>, vector<64x1xf32>
    %cst_9 = arith.constant 9.99999974E-6 : f32
    %15 = vector.broadcast %cst_9 : f32 to vector<64x1xf32>
    %16 = arith.addf %13, %15 : vector<64x1xf32>
    %17 = math.rsqrt %16 : vector<64x1xf32>
    %18 = arith.mulf %14, %17 : vector<64x1xf32>
    %c0_10 = arith.constant 0 : index
    %c0_11 = arith.constant 0 : index
    %19 = vector.load %arg4[%c0_10, %c0_11] : memref<64x1xf32, #tpu.memory_space<vmem>>, vector<64x1xf32>
    %20 = arith.mulf %6, %18 : vector<64x1xf32>
    %21 = arith.subf %19, %20 : vector<64x1xf32>
    %22 = vector.broadcast %18 : vector<64x1xf32> to vector<64x32xf32>
    %23 = arith.mulf %2, %22 : vector<64x32xf32>
    %24 = vector.broadcast %21 : vector<64x1xf32> to vector<64x32xf32>
    %25 = arith.addf %23, %24 : vector<64x32xf32>
    %cst_12 = arith.constant 0.000000e+00 : f32
    %26 = vector.broadcast %cst_12 : f32 to vector<64x32xf32>
    %27 = arith.cmpf oge, %25, %26 : vector<64x32xf32>
    %cst_13 = arith.constant 2.000000e-01 : f32
    %28 = vector.broadcast %cst_13 : f32 to vector<64x32xf32>
    %29 = arith.mulf %28, %25 : vector<64x32xf32>
    %30 = arith.select %27, %25, %29 : vector<64x32xi1>, vector<64x32xf32>
    %c0_14 = arith.constant 0 : index
    %c0_15 = arith.constant 0 : index
    %31 = vector.load %arg5[%c0_14, %c0_15] : memref<64x32xf32, #tpu.memory_space<vmem>>, vector<64x32xf32>
    tpu.vector_store %arg5[%c0_14, %c0_15], %30 {strides = array<i32>} : memref<64x32xf32, #tpu.memory_space<vmem>>, vector<64x32xf32>,
    return
  }
  func.func @transform_0(%arg0: i32) -> (i32, i32) {
    %c0_i32 = arith.constant 0 : i32
    %c0_i32_0 = arith.constant 0 : i32
    %c0_i32_1 = arith.constant 0 : i32
    return %c0_i32, %c0_i32_0 : i32, i32
  }
  func.func @transform_1(%arg0: i32) -> (i32, i32) {
    %c0_i32 = arith.constant 0 : i32
    %c0_i32_0 = arith.constant 0 : i32
    %c0_i32_1 = arith.constant 0 : i32
    return %c0_i32, %c0_i32_0 : i32, i32
  }
  func.func @transform_2(%arg0: i32) -> (i32, i32) {
    %c0_i32 = arith.constant 0 : i32
    %c0_i32_0 = arith.constant 0 : i32
    %c0_i32_1 = arith.constant 0 : i32
    return %c0_i32, %c0_i32_0 : i32, i32
  }
  func.func @transform_3(%arg0: i32) -> (i32, i32) {
    %c0_i32 = arith.constant 0 : i32
    %c0_i32_0 = arith.constant 0 : i32
    %c0_i32_1 = arith.constant 0 : i32
    return %c0_i32, %c0_i32_0 : i32, i32
  }
  func.func @transform_4(%arg0: i32) -> (i32, i32) {
    %c0_i32 = arith.constant 0 : i32
    %c0_i32_0 = arith.constant 0 : i32
    %c0_i32_1 = arith.constant 0 : i32
    return %c0_i32, %c0_i32_0 : i32, i32
  }
}

module attributes {stable_mosaic.version = 11 : i64} {
  func.func @_matmul_bias_kernel(%arg0: i32, %arg1: memref<16x1024xf32, #tpu.memory_space<vmem>>, %arg2: memref<1024x2xf32, #tpu.memory_space<vmem>>, %arg3: memref<16x1xf32, #tpu.memory_space<vmem>>, %arg4: memref<16x2xf32, #tpu.memory_space<vmem>>) attributes {dimension_semantics = [#tpu.dimension_semantics<arbitrary>], iteration_bounds = array<i64: 1>, scalar_prefetch = 0 : i64, scratch_operands = 0 : i64, tpu.core_type = #tpu.core_type<tc>, window_params = [{pipeline_mode = #tpu.pipeline_mode<synchronous>, transform_indices = @transform_0, window_bounds = array<i64: 16, 1024>}, {pipeline_mode = #tpu.pipeline_mode<synchronous>, transform_indices = @transform_1, window_bounds = array<i64: 1024, 2>}, {pipeline_mode = #tpu.pipeline_mode<synchronous>, transform_indices = @transform_2, window_bounds = array<i64: 16, 1>}, {pipeline_mode = #tpu.pipeline_mode<synchronous>, transform_indices = @transform_3, window_bounds = array<i64: 16, 2>}]} {
    %c0 = arith.constant 0 : index
    %c0_0 = arith.constant 0 : index
    %0 = vector.load %arg1[%c0, %c0_0] : memref<16x1024xf32, #tpu.memory_space<vmem>>, vector<16x1024xf32>
    %c0_1 = arith.constant 0 : index
    %c0_2 = arith.constant 0 : index
    %1 = vector.load %arg2[%c0_1, %c0_2] : memref<1024x2xf32, #tpu.memory_space<vmem>>, vector<1024x2xf32>
    %cst = arith.constant dense<0.000000e+00> : vector<16x2xf32>
    %2 = tpu.matmul %0, %1, %cst {dimension_numbers = #tpu.dot_dimension_numbers<[1], [0], [0], [1], [0, 0, 1, 1], [], []>} : vector<16x1024xf32>, vector<1024x2xf32>, vector<16x2xf32> -> vector<16x2xf32>
    %c0_3 = arith.constant 0 : index
    %c0_4 = arith.constant 0 : index
    %3 = vector.load %arg3[%c0_3, %c0_4] : memref<16x1xf32, #tpu.memory_space<vmem>>, vector<16x1xf32>
    %4 = vector.broadcast %3 : vector<16x1xf32> to vector<16x2xf32>
    %5 = arith.addf %2, %4 : vector<16x2xf32>
    %c0_5 = arith.constant 0 : index
    %c0_6 = arith.constant 0 : index
    %6 = vector.load %arg4[%c0_5, %c0_6] : memref<16x2xf32, #tpu.memory_space<vmem>>, vector<16x2xf32>
    tpu.vector_store %arg4[%c0_5, %c0_6], %5 {strides = array<i32>} : memref<16x2xf32, #tpu.memory_space<vmem>>, vector<16x2xf32>,
    return
  }
  func.func @transform_0(%arg0: i32) -> (i32, i32) {
    %c0_i32 = arith.constant 0 : i32
    %c0_i32_0 = arith.constant 0 : i32
    %c0_i32_1 = arith.constant 0 : i32
    return %c0_i32, %c0_i32_0 : i32, i32
  }
  func.func @transform_1(%arg0: i32) -> (i32, i32) {
    %c0_i32 = arith.constant 0 : i32
    %c0_i32_0 = arith.constant 0 : i32
    %c0_i32_1 = arith.constant 0 : i32
    return %c0_i32, %c0_i32_0 : i32, i32
  }
  func.func @transform_2(%arg0: i32) -> (i32, i32) {
    %c0_i32 = arith.constant 0 : i32
    %c0_i32_0 = arith.constant 0 : i32
    %c0_i32_1 = arith.constant 0 : i32
    return %c0_i32, %c0_i32_0 : i32, i32
  }
  func.func @transform_3(%arg0: i32) -> (i32, i32) {
    %c0_i32 = arith.constant 0 : i32
    %c0_i32_0 = arith.constant 0 : i32
    %c0_i32_1 = arith.constant 0 : i32
    return %c0_i32, %c0_i32_0 : i32, i32
  }
}

</mosaic_0001>

<bundles_post_ra>
// kernel: den_encoder_forward.5
= control target key start
LH: loop header
LB: loop body
LE: loop exit
PB: predicated region body
PF: predicated region fallthrough
CT: control target
= control target key end

     0   :  { %s619_s9 = smov 0   ;;  %s621_s10 = smov 0   ;;  %s680_s0 = inlined_call_operand.vmem [shape: bf16[8,16], index: 0, kind: input, shape index: {}]   ;;  %s681_s1 = inlined_call_operand.vmem [shape: bf16[16,2048], index: 1, kind: input, shape index: {}]   ;;  %s682_s2 = inlined_call_operand.vmem [shape: bf16[8,2048], index: 2, kind: output, shape index: {}]  }
   0x1   :  { %s623_s11 = smov 0  }
   0x2 LB: > { %s520_s12 = sadd.s32 4294967295, %s601_s11   ;;  %s636_s13 = sadd.s32 1, %s601_s11   ;;  %s601_s11 = sphi %s623_s11, %s685_s11   ;;  %s597_s10 = sphi %s621_s10, %s684_s10   ;;  %s593_s9 = sphi %s619_s9, %s683_s9  }
   0x3   : > { %s37_s14 = ssub.s32 %s601_s11, %s636_s13  ;;  %s40_s15 = sadd.s32 1, %s597_s10 }
   0x4   : > { %p38_p0 = scmp.eq.s32.totalorder %s37_s14, 0  ;;  %p47_p1 = scmp.ne.s32.totalorder %s597_s10, %s593_s9 }
   0x5   : > { %p48_p2 = scmp.eq.s32.totalorder %s601_s11, 0  ;;  %p523_p4 = scmp.ge.s32.totalorder %s601_s11, 2 }
   0x6   : > { %s645_s16 = scalar_select %p38_p0, %s597_s10, %s40_s15  }
   0x7   : > { %p49_p3 = por %p48_p2, %p47_p1  ;;  %102 = sbr.rel (%p523_p4) target bundleno = 22 (0x16), region = 20 }
   0xe   : > { %105 = sbr.rel (!%p49_p3) target bundleno = 22 (0x16), region = 24  ;;  %s107_s17 = sand.u32 (%p49_p3), 1, %s597_s10  }
   0xf   : > { %s549_s18 = sshll.u32 (%p49_p3), %s601_s11, 5  ;;  %s524_s19 = sshll.u32 (%p49_p3), %s107_s17, 6 }
  0x10   : > { %s112_s22 = scalar_lea.vmem (%p49_p3), %s681_s1, %s549_s18  ;;  %s109_s23 = scalar_lea.vmem (%p49_p3), [#allocation2], %s524_s19 }
  0x11   : > { %v125_v0 = vld [vmem:[%s112_s22] sm:$0xff] (%p49_p3)  ;;  %v127_v1 = vld [vmem:[%s112_s22 + $0x8] sm:$0xff] (%p49_p3)  ;;  %v129_v2 = vld [vmem:[%s112_s22 + $0x10] sm:$0xff] (%p49_p3) }
  0x12   : > { %126 = vst [vmem:[%s109_s23] sm:$0xff] (%p49_p3), %v125_v0  ;;  %128 = vst [vmem:[%s109_s23 + $0x8] sm:$0xff] (%p49_p3), %v127_v1  ;;  %v131_v3 = vld [vmem:[%s112_s22 + $0x18] sm:$0xff] (%p49_p3)  ;;  %v133_v4 = vld [vmem:[%s112_s22 + $0x40] sm:$0xff] (%p49_p3) }
  0x13   : > { %130 = vst [vmem:[%s109_s23 + $0x10] sm:$0xff] (%p49_p3), %v129_v2  ;;  %v135_v5 = vld [vmem:[%s112_s22 + $0x48] sm:$0xff] (%p49_p3)  ;;  %132 = vst [vmem:[%s109_s23 + $0x18] sm:$0xff] (%p49_p3), %v131_v3  ;;  %v137_v6 = vld [vmem:[%s112_s22 + $0x50] sm:$0xff] (%p49_p3) }
  0x14   : > { %134 = vst [vmem:[%s109_s23 + $0x20] sm:$0xff] (%p49_p3), %v133_v4  ;;  %136 = vst [vmem:[%s109_s23 + $0x28] sm:$0xff] (%p49_p3), %v135_v5  ;;  %v139_v7 = vld [vmem:[%s112_s22 + $0x58] sm:$0xff] (%p49_p3) }
  0x15   : > { %138 = vst [vmem:[%s109_s23 + $0x30] sm:$0xff] %v137_v6  ;;  %140 = vst [vmem:[%s109_s23 + $0x38] sm:$0xff] %v139_v7 }
  0x16 PF: > { %p527_p5 = scmp.ge.s32.totalorder %s601_s11, 1  ;;  %p145_p6 = scmp.lt.s32.totalorder %s601_s11, 3 }
  0x18   : > { %p146_p7 = pnand %p527_p5, %p145_p6 }
  0x19   : > { %s152_s24 = sand.u32 (!%p146_p7), 1, %s593_s9   ;;  %v603_v8 = vmov (!%p146_p7), 0   ;;  %v181_v23 = vld [vmem:[%s680_s0] sm:$0xf] (!%p146_p7)  ;;  %vm230_vm0 = vcmask (!%p146_p7), 130048   ;;  %s529_s29 = sshll.u32 (!%p146_p7), %s520_s12, 3 }
  0x1a   : > { %149 = sbr.rel (%p146_p7) target bundleno = 264 (0x108), region = 47  ;;  %s528_s25 = sshll.u32 (!%p146_p7), %s152_s24, 6  ;;  %266 = vmatprep.mubr.bf16.mxu0 (!%p146_p7), %v603_v8  ;;  %307 = vmatprep.mubr.bf16.mxu1 (!%p146_p7), %v603_v8 }
  0x1b   : > { %s154_s26 = scalar_lea.vmem (!%p146_p7), [#allocation2], %s528_s25  ;;  %p175_p8 = scmp.lt.s32.totalorder (!%p146_p7), %s529_s29, 15 }
  0x1c   : > { %v182_v9 = vld [vmem:[%s154_s26] sm:$0xff] (!%p146_p7)  ;;  %v183_v11 = vld [vmem:[%s154_s26 + $0x8] sm:$0xff] (!%p146_p7)  ;;  %v184_v15 = vld [vmem:[%s154_s26 + $0x10] sm:$0xff] (!%p146_p7) }
  0x1d   : > { %v186_v10 = vld [vmem:[%s154_s26 + $0x20] sm:$0xff] (!%p146_p7)  ;;  %v187_v13 = vld [vmem:[%s154_s26 + $0x28] sm:$0xff] (!%p146_p7)  ;;  %v188_v16 = vld [vmem:[%s154_s26 + $0x30] sm:$0xff] (!%p146_p7) }
  0x1e   : > { %v532_v12 = vcombine.high (!%p146_p7), %v182_v9, %v186_v10  ;;  %v531_v14 = vcombine.low (!%p146_p7), %v182_v9, %v186_v10  ;;  %v534_v17 = vcombine.high (!%p146_p7), %v183_v11, %v187_v13  ;;  %v533_v18 = vcombine.low (!%p146_p7), %v183_v11, %v187_v13  ;;  %v185_v20 = vld [vmem:[%s154_s26 + $0x18] sm:$0xff] (!%p146_p7) }
  0x1f   : > { %v536_v19 = vcombine.high (!%p146_p7), %v184_v15, %v188_v16  ;;  %v189_v21 = vld [vmem:[%s154_s26 + $0x38] sm:$0xff] (!%p146_p7)  ;;  %v535_v24 = vcombine.low (!%p146_p7), %v184_v15, %v188_v16 }
  0x20   : > { %234 = vmatprep.subr.bf16.mxu0 (!%p146_p7), %v532_v12  ;;  %v538_v22 = vcombine.high (!%p146_p7), %v185_v20, %v189_v21  ;;  %275 = vmatprep.subr.bf16.mxu1 (!%p146_p7), %v534_v17  ;;  %v537_v25 = vcombine.low (!%p146_p7), %v185_v20, %v189_v21 }
  0x21   : > { %235 = vmatpush1.bf16.msra.mxu0 %v531_v14  ;;  %276 = vmatpush1.bf16.msra.mxu1 %v533_v18  ;;  %s687_s29 = smov (!%p175_p8, %s529_s29), 15 }
  0x22   : > { %316 = vmatprep.subr.bf16.mxu0 %v536_v19  ;;  %357 = vmatprep.subr.bf16.mxu1 %v538_v22  ;;  %s530_s30 = sshll.u32 %s687_s29, 2 }
  0x23   : > { %s664_s5 = scalar_lea.vmem %s682_s2, %s530_s30 }
  0x24   : > { %539 = vmatmul.mubr.msk.bf16.vlgmr.msra.gmra.mrb[0].mxu0 %vm230_vm0, %v181_v23  ;;  %540 = vmatmul.mubr.msk.bf16.vlgmr.msra.gmra.mrb[0].mxu1 %vm230_vm0, %v181_v23 }
  0x25   : > { %317 = vmatpush1.bf16.msra.mxu0 %v535_v24  ;;  %358 = vmatpush1.bf16.msra.mxu1 %v537_v25 }
  0x26   : > { %348 = vmatprep.mubr.bf16.mxu0 %v603_v8  ;;  %389 = vmatprep.mubr.bf16.mxu1 %v603_v8 }
  0x2c   : > { %541 = vmatmul.mubr.msk.bf16.vlgmr.msra.gmra.mrb[4].mxu0 %vm230_vm0, %v181_v23  ;;  %542 = vmatmul.mubr.msk.bf16.vlgmr.msra.gmra.mrb[4].mxu1 %vm230_vm0, %v181_v23 }
  0xf7   : > { %v268_v26 = vpop.f32.mrb[0].mxu0  ;;  %v309_v28 = vpop.f32.mrb[0].mxu1 }
  0xf8   : > { %vm398_vm1 = vcmp.ge.f32.partialorder %v268_v26, 0.0  ;;  %v406_v27 = vmul.f32 0.2, %v268_v26  ;;  %v270_v29 = vpop.f32.mrb[1].mxu0  ;;  %vm400_vm2 = vcmp.ge.f32.partialorder %v309_v28, 0.0  ;;  %v311_v33 = vpop.f32.mrb[1].mxu1 }
  0xf9   : > { %v408_v30 = vmul.f32 0.2, %v309_v28  ;;  %vm399_vm3 = vcmp.ge.f32.partialorder %v270_v29, 0.0  ;;  %v407_v31 = vmul.f32 0.2, %v270_v29  ;;  %v272_v34 = vpop.f32.mrb[2].mxu0 }
  0xfa   : > { %v414_v32 = vsel %vm398_vm1, %v268_v26, %v406_v27  ;;  %vm401_vm4 = vcmp.ge.f32.partialorder %v311_v33, 0.0  ;;  %v409_v37 = vmul.f32 0.2, %v311_v33  ;;  %v313_v38 = vpop.f32.mrb[2].mxu1  ;;  %v273_v39 = vpop.f32.mrb[3].mxu0 }
  0xfb   : > { %v416_v35 = vsel %vm400_vm2, %v309_v28, %v408_v30  ;;  %v415_v36 = vsel %vm399_vm3, %v270_v29, %v407_v31  ;;  %v314_v41 = vpop.f32.mrb[3].mxu1 }
  0xfc   : > { %v550_v40 = vpack.c.bf16 %v415_v36, %v414_v32  ;;  %v417_v42 = vsel %vm401_vm4, %v311_v33, %v409_v37 }
  0xfd   : > { %v551_v43 = vpack.c.bf16 %v417_v42, %v416_v35 }
  0xfe   : > { %454 = vst [vmem:[%s664_s5] sm:$0xff] %v550_v40 }
  0xff   : > { %v350_v44 = vpop.f32.mrb[4].mxu0  ;;  %455 = vst [vmem:[%s664_s5 + $0x8] sm:$0xff] %v551_v43  ;;  %v391_v46 = vpop.f32.mrb[4].mxu1 }
 0x100   : > { %vm402_vm5 = vcmp.ge.f32.partialorder %v350_v44, 0.0  ;;  %v410_v45 = vmul.f32 0.2, %v350_v44  ;;  %v352_v47 = vpop.f32.mrb[5].mxu0  ;;  %vm404_vm6 = vcmp.ge.f32.partialorder %v391_v46, 0.0  ;;  %v393_v51 = vpop.f32.mrb[5].mxu1 }
 0x101   : > { %v412_v48 = vmul.f32 0.2, %v391_v46  ;;  %vm403_vm7 = vcmp.ge.f32.partialorder %v352_v47, 0.0  ;;  %v411_v49 = vmul.f32 0.2, %v352_v47  ;;  %v354_v52 = vpop.f32.mrb[6].mxu0 }
 0x102   : > { %v418_v50 = vsel %vm402_vm5, %v350_v44, %v410_v45  ;;  %vm405_vm8 = vcmp.ge.f32.partialorder %v393_v51, 0.0  ;;  %v413_v55 = vmul.f32 0.2, %v393_v51  ;;  %v395_v56 = vpop.f32.mrb[6].mxu1  ;;  %v355_v57 = vpop.f32.mrb[7].mxu0 }
 0x103   : > { %v420_v53 = vsel %vm404_vm6, %v391_v46, %v412_v48  ;;  %v419_v54 = vsel %vm403_vm7, %v352_v47, %v411_v49  ;;  %v396_v59 = vpop.f32.mrb[7].mxu1 }
 0x104   : > { %v552_v58 = vpack.c.bf16 %v419_v54, %v418_v50  ;;  %v421_v60 = vsel %vm405_vm8, %v393_v51, %v413_v55 }
 0x105   : > { %v553_v61 = vpack.c.bf16 %v421_v60, %v420_v53 }
 0x106   : > { %456 = vst [vmem:[%s664_s5 + $0x10] sm:$0xff] %v552_v58 }
 0x107   : > { %457 = vst [vmem:[%s664_s5 + $0x18] sm:$0xff] %v553_v61 }
 0x108 PF: > { %p9_p9 = scmp.ge.s32.totalorder %s636_s13, 4   ;;  %s683_s9 = smov %s597_s10 }
 0x109   : > { %s684_s10 = smov %s645_s16  ;;  %s685_s11 = smov %s636_s13 }
 0x10a   :  { %11 = sbr.rel (!%p9_p9) target bundleno = 2 (0x2), region = 86 }

// kernel: den_encoder_forward.6
= control target key start
LH: loop header
LB: loop body
LE: loop exit
PB: predicated region body
PF: predicated region fallthrough
CT: control target
= control target key end

     0   :  { %v547_v1 = vmov 0   ;;  %s736_s1 = inlined_call_operand.vmem [shape: bf16[128,512], index: 1, kind: input, shape index: {}]   ;;  %s737_s0 = inlined_call_operand.vmem [shape: bf16[16,128], index: 0, kind: input, shape index: {}]   ;;  %s738_s2 = inlined_call_operand.vmem [shape: f32[16,1], index: 2, kind: input, shape index: {}]   ;;  %s739_s3 = inlined_call_operand.vmem [shape: f32[16,1], index: 3, kind: input, shape index: {}]   ;;  %s740_s4 = inlined_call_operand.vmem [shape: bf16[16,512], index: 4, kind: output, shape index: {}]  }
   0x1   :  { %v494_v0 = vld [vmem:[%s736_s1 + $0x4] ss:$16 sps:$4 sm:$0xff]   ;;  %250 = vmatprep.mubr.bf16.mxu0 %v547_v1  ;;  %293 = vmatprep.mubr.bf16.mxu1 %v547_v1  ;;  %v496_v2 = vld [vmem:[%s736_s1 + $0xc] ss:$16 sps:$4 sm:$0xff]   ;;  %v498_v3 = vld [vmem:[%s736_s1] ss:$16 sps:$4 sm:$0xff]  }
   0x2   :  { %492 = vset.pattern.permute.xlu0 %v547_v1  ;;  %493 = vset.pattern.permute.xlu1 %v547_v1  ;;  %v499_v4 = vld [vmem:[%s736_s1 + $0x8] ss:$16 sps:$4 sm:$0xff]   ;;  %v500_v5 = vld [vmem:[%s736_s1 + $0x24] ss:$16 sps:$4 sm:$0xff]   ;;  %v502_v6 = vld [vmem:[%s736_s1 + $0x2c] ss:$16 sps:$4 sm:$0xff]  }
   0x3   :  { %218 = vmatprep.subr.bf16.mxu0 %v494_v0  ;;  %261 = vmatprep.subr.bf16.mxu1 %v496_v2  ;;  %v504_v7 = vld [vmem:[%s736_s1 + $0x20] ss:$16 sps:$4 sm:$0xff]   ;;  %v505_v8 = vld [vmem:[%s736_s1 + $0x28] ss:$16 sps:$4 sm:$0xff]   ;;  %v506_v9 = vld [vmem:[%s736_s1 + $0x44] ss:$16 sps:$4 sm:$0xff]  }
   0x4   :  { %219 = vmatpush1.bf16.msra.mxu0 %v498_v3  ;;  %262 = vmatpush1.bf16.msra.mxu1 %v499_v4  ;;  %v508_v10 = vld [vmem:[%s736_s1 + $0x4c] ss:$16 sps:$4 sm:$0xff]   ;;  %v510_v11 = vld [vmem:[%s736_s1 + $0x40] ss:$16 sps:$4 sm:$0xff]   ;;  %v511_v12 = vld [vmem:[%s736_s1 + $0x48] ss:$16 sps:$4 sm:$0xff]  }
   0x5   :  { %220 = vmatprep.subr.bf16.mxu0 %v500_v5  ;;  %263 = vmatprep.subr.bf16.mxu1 %v502_v6  ;;  %v512_v13 = vld [vmem:[%s736_s1 + $0x64] ss:$16 sps:$4 sm:$0xff]   ;;  %v514_v14 = vld [vmem:[%s736_s1 + $0x6c] ss:$16 sps:$4 sm:$0xff]   ;;  %v516_v15 = vld [vmem:[%s736_s1 + $0x60] ss:$16 sps:$4 sm:$0xff]  }
   0x6   :  { %v517_v16 = vld [vmem:[%s736_s1 + $0x68] ss:$16 sps:$4 sm:$0xff]   ;;  %v518_v17 = vld [vmem:[%s736_s1 + $0x84] ss:$16 sps:$4 sm:$0xff]   ;;  %v520_v18 = vld [vmem:[%s736_s1 + $0x8c] ss:$16 sps:$4 sm:$0xff]  }
   0x7   :  { %v522_v19 = vld [vmem:[%s736_s1 + $0x80] ss:$16 sps:$4 sm:$0xff]   ;;  %v523_v20 = vld [vmem:[%s736_s1 + $0x88] ss:$16 sps:$4 sm:$0xff]   ;;  %v524_v21 = vld [vmem:[%s736_s1 + $0xa4] ss:$16 sps:$4 sm:$0xff]  }
   0x8   :  { %221 = vmatpush1.bf16.msra.mxu0 %v504_v7  ;;  %264 = vmatpush1.bf16.msra.mxu1 %v505_v8  ;;  %v526_v22 = vld [vmem:[%s736_s1 + $0xac] ss:$16 sps:$4 sm:$0xff]   ;;  %v528_v23 = vld [vmem:[%s736_s1 + $0xa0] ss:$16 sps:$4 sm:$0xff]   ;;  %v529_v24 = vld [vmem:[%s736_s1 + $0xa8] ss:$16 sps:$4 sm:$0xff]  }
   0x9   :  { %222 = vmatprep.subr.bf16.mxu0 %v506_v9  ;;  %265 = vmatprep.subr.bf16.mxu1 %v508_v10  ;;  %v530_v25 = vld [vmem:[%s736_s1 + $0xc4] ss:$16 sps:$4 sm:$0xff]   ;;  %v532_v26 = vld [vmem:[%s736_s1 + $0xcc] ss:$16 sps:$4 sm:$0xff]   ;;  %v534_v27 = vld [vmem:[%s736_s1 + $0xc0] ss:$16 sps:$4 sm:$0xff]  }
   0xa   :  { %v535_v28 = vld [vmem:[%s736_s1 + $0xc8] ss:$16 sps:$4 sm:$0xff]   ;;  %v536_v29 = vld [vmem:[%s736_s1 + $0xe4] ss:$16 sps:$4 sm:$0xff]   ;;  %v538_v30 = vld [vmem:[%s736_s1 + $0xec] ss:$16 sps:$4 sm:$0xff]  }
   0xb   :  { %v540_v31 = vld [vmem:[%s736_s1 + $0xe0] ss:$16 sps:$4 sm:$0xff]   ;;  %v541_v32 = vld [vmem:[%s736_s1 + $0xe8] ss:$16 sps:$4 sm:$0xff]  }
   0xc   :  { %223 = vmatpush1.bf16.msra.mxu0 %v510_v11  ;;  %266 = vmatpush1.bf16.msra.mxu1 %v511_v12  ;;  %v542_v33 = vld [vmem:[%s737_s0] sm:$0xff]  }
   0xd   :  { %224 = vmatprep.subr.bf16.mxu0 %v512_v13  ;;  %267 = vmatprep.subr.bf16.mxu1 %v514_v14 }
  0x10   :  { %225 = vmatpush1.bf16.msra.mxu0 %v516_v15  ;;  %268 = vmatpush1.bf16.msra.mxu1 %v517_v16  ;;  %v344_v16 = vld [vmem:[%s738_s2] sm:$0xff] }
  0x11   :  { %226 = vmatprep.subr.bf16.mxu0 %v518_v17  ;;  %269 = vmatprep.subr.bf16.mxu1 %v520_v18 }
  0x14   :  { %227 = vmatpush1.bf16.msra.mxu0 %v522_v19  ;;  %270 = vmatpush1.bf16.msra.mxu1 %v523_v20  ;;  %v345_v19 = vld [vmem:[%s738_s2 + $0x8] sm:$0xff] }
  0x15   :  { %228 = vmatprep.subr.bf16.mxu0 %v524_v21  ;;  %271 = vmatprep.subr.bf16.mxu1 %v526_v22 }
  0x18   :  { %229 = vmatpush1.bf16.msra.mxu0 %v528_v23  ;;  %272 = vmatpush1.bf16.msra.mxu1 %v529_v24  ;;  %v352_v23 = vld [vmem:[%s739_s3] sm:$0xff] }
  0x19   :  { %230 = vmatprep.subr.bf16.mxu0 %v530_v25  ;;  %273 = vmatprep.subr.bf16.mxu1 %v532_v26  ;;  %v353_v26 = vld [vmem:[%s739_s3 + $0x8] sm:$0xff] }
  0x1c   :  { %231 = vmatpush1.bf16.msra.mxu0 %v534_v27  ;;  %274 = vmatpush1.bf16.msra.mxu1 %v535_v28 }
  0x1d   :  { %232 = vmatprep.subr.bf16.mxu0 %v536_v29  ;;  %275 = vmatprep.subr.bf16.mxu1 %v538_v30 }
  0x20   :  { %233 = vmatpush1.bf16.msra.mxu0 %v540_v31  ;;  %276 = vmatpush1.bf16.msra.mxu1 %v541_v32 }
  0x23   :  { %251 = vmatmul.mubr.bf16.vlgmr.msra.gmra.mrb[0].mxu0 %v542_v33  ;;  %294 = vmatmul.mubr.bf16.vlgmr.msra.gmra.mrb[0].mxu1 %v542_v33 }
  0xf6   :  { %v672_v34 = vpop.f32.mrb[0].mxu0  ;;  %v674_v35 = vpop.f32.mrb[0].mxu1 }
  0xf7   :  { %v676_v36 = vpop.f32.mrb[1].mxu0  ;;  %v678_v37 = vpop.f32.mrb[1].mxu1 }
  0xf8   :  { %v304_v38 = vadd.f32 %v676_v36, %v672_v34  ;;  %v682_v39 = vpop.f32.mrb[2].mxu0  ;;  %v684_v40 = vpop.f32.mrb[2].mxu1 }
  0xf9   :  { %v686_v41 = vpop.f32.mrb[3].mxu0  ;;  %v688_v42 = vpop.f32.mrb[3].mxu1 }
  0xfa   :  { %v309_v43 = vadd.f32 %v686_v41, %v682_v39  ;;  %v305_v44 = vadd.f32 %v304_v38, %v674_v35 }
  0xfc   :  { %v306_v45 = vadd.f32 %v305_v44, %v678_v37  ;;  %v310_v46 = vadd.f32 %v309_v43, %v684_v40 }
  0xfe   :  { %307 = vadd.xlane.f32.xlu0 %v306_v45  ;;  %v311_v47 = vadd.f32 %v310_v46, %v688_v42 }
 0x102   :  { %312 = vadd.xlane.f32.xlu0 %v311_v47 }
 0x18b   :  { %v308_v48 = vpop.xlane.xlu0 %307 }
 0x18c   :  { %v314_v49 = vmul.f32 0.001953125, %v308_v48 }
 0x18e   :  { %v316_v50 = vsub.f32 %v672_v34, %v314_v49  ;;  %v317_v51 = vsub.f32 %v676_v36, %v314_v49  ;;  %v318_v52 = vsub.f32 %v674_v35, %v314_v49  ;;  %v319_v54 = vsub.f32 %v678_v37, %v314_v49 }
 0x18f   :  { %v313_v53 = vpop.xlane.xlu0 %312 }
 0x190   :  { %v315_v55 = vmul.f32 0.001953125, %v313_v53  ;;  %v324_v56 = vmul.f32 %v316_v50, %v316_v50  ;;  %v325_v57 = vmul.f32 %v317_v51, %v317_v51  ;;  %v326_v58 = vmul.f32 %v318_v52, %v318_v52 }
 0x191   :  { %v327_v63 = vmul.f32 %v319_v54, %v319_v54 }
 0x192   :  { %v332_v59 = vadd.f32 %v325_v57, %v324_v56  ;;  %v320_v60 = vsub.f32 %v682_v39, %v315_v55  ;;  %v321_v61 = vsub.f32 %v686_v41, %v315_v55  ;;  %v322_v62 = vsub.f32 %v684_v40, %v315_v55 }
 0x193   :  { %v323_v1 = vsub.f32 %v688_v42, %v315_v55 }
 0x194   :  { %v333_v0 = vadd.f32 %v332_v59, %v326_v58  ;;  %v328_v2 = vmul.f32 %v320_v60, %v320_v60  ;;  %v329_v3 = vmul.f32 %v321_v61, %v321_v61  ;;  %v330_v5 = vmul.f32 %v322_v62, %v322_v62 }
 0x195   :  { %v331_v7 = vmul.f32 %v323_v1, %v323_v1 }
 0x196   :  { %v334_v4 = vadd.f32 %v333_v0, %v327_v63  ;;  %v337_v6 = vadd.f32 %v329_v3, %v328_v2 }
 0x198   :  { %335 = vadd.xlane.f32.xlu1 %v334_v4  ;;  %v338_v8 = vadd.f32 %v337_v6, %v330_v5 }
 0x19a   :  { %v339_v9 = vadd.f32 %v338_v8, %v331_v7 }
 0x19c   :  { %340 = vadd.xlane.f32.xlu1 %v339_v9 }
 0x225   :  { %v336_v10 = vpop.xlane.xlu1 %335 }
 0x226   :  { %v342_v11 = vmul.f32 0.001953125, %v336_v10 }
 0x228   :  { %v346_v12 = vadd.f32 1e-05, %v342_v11 }
 0x229   :  { %v341_v13 = vpop.xlane.xlu1 %340 }
 0x22a   :  { %543 = vrsqrt.f32 %v346_v12  ;;  %v343_v14 = vmul.f32 0.001953125, %v341_v13 }
 0x22c   :  { %v347_v15 = vadd.f32 1e-05, %v343_v14 }
 0x22e   :  { %545 = vrsqrt.f32 %v347_v15 }
 0x234   :  { %v544_v17 = vpop.eup %543 }
 0x235   :  { %v350_v18 = vmul.f32 %v544_v17, %v344_v16 }
 0x237   :  { %360 = vperm.xlu0 %492, %v350_v18   ;;  %v354_v22 = vmul.f32 %v350_v18, %v314_v49 }
 0x238   :  { %v546_v20 = vpop.eup %545 }
 0x239   :  { %v351_v21 = vmul.f32 %v546_v20, %v345_v19  ;;  %v356_v24 = vsub.f32 %v352_v23, %v354_v22 }
 0x23b   :  { %365 = vperm.xlu1 %493, %v351_v21   ;;  %v355_v25 = vmul.f32 %v351_v21, %v315_v55 }
 0x23d   :  { %v357_v27 = vsub.f32 %v353_v26, %v355_v25 }
 0x23f   :  { %378 = vperm.xlu1 %493, %v356_v24  }
 0x243   :  { %383 = vperm.xlu1 %493, %v357_v27  }
 0x2b6   :  { %v361_v28 = vpop.permute.xlu0 %360 }
 0x2b7   :  { %v368_v30 = vmul.f32 %v361_v28, %v672_v34  ;;  %v369_v31 = vmul.f32 %v361_v28, %v676_v36  ;;  %v370_v32 = vmul.f32 %v361_v28, %v674_v35  ;;  %v371_v33 = vmul.f32 %v361_v28, %v678_v37 }
 0x2ba   :  { %v366_v29 = vpop.permute.xlu1 %365 }
 0x2bb   :  { %v372_v47 = vmul.f32 %v366_v29, %v682_v39  ;;  %v373_v48 = vmul.f32 %v366_v29, %v686_v41  ;;  %v374_v49 = vmul.f32 %v366_v29, %v684_v40  ;;  %v375_v37 = vmul.f32 %v366_v29, %v688_v42 }
 0x2be   :  { %v379_v38 = vpop.permute.xlu1 %378 }
 0x2bf   :  { %v386_v43 = vadd.f32 %v379_v38, %v368_v30  ;;  %v387_v44 = vadd.f32 %v379_v38, %v369_v31  ;;  %v388_v45 = vadd.f32 %v379_v38, %v370_v32  ;;  %v389_v46 = vadd.f32 %v379_v38, %v371_v33 }
 0x2c1   :  { %vm394_vm0 = vcmp.ge.f32.partialorder %v386_v43, 0.0  ;;  %vm395_vm1 = vcmp.ge.f32.partialorder %v387_v44, 0.0  ;;  %vm396_vm2 = vcmp.ge.f32.partialorder %v388_v45, 0.0  ;;  %vm397_vm3 = vcmp.ge.f32.partialorder %v389_v46, 0.0 }
 0x2c2   :  { %v402_v34 = vmul.f32 0.2, %v386_v43  ;;  %v403_v36 = vmul.f32 0.2, %v387_v44  ;;  %v404_v35 = vmul.f32 0.2, %v388_v45  ;;  %v384_v50 = vpop.permute.xlu1 %383 }
 0x2c3   :  { %v405_v51 = vmul.f32 0.2, %v389_v46  ;;  %v390_v52 = vadd.f32 %v384_v50, %v372_v47  ;;  %v391_v53 = vadd.f32 %v384_v50, %v373_v48  ;;  %v392_v54 = vadd.f32 %v384_v50, %v374_v49 }
 0x2c4   :  { %v410_v55 = vsel %vm394_vm0, %v386_v43, %v402_v34  ;;  %v411_v39 = vsel %vm395_vm1, %v387_v44, %v403_v36  ;;  %v412_v56 = vsel %vm396_vm2, %v388_v45, %v404_v35  ;;  %v393_v41 = vadd.f32 %v384_v50, %v375_v37 }
 0x2c5   :  { %v413_v57 = vsel %vm397_vm3, %v389_v46, %v405_v51  ;;  %v487_v40 = vpack.c.bf16 %v411_v39, %v410_v55  ;;  %vm398_vm4 = vcmp.ge.f32.partialorder %v390_v52, 0.0  ;;  %vm399_vm5 = vcmp.ge.f32.partialorder %v391_v53, 0.0 }
 0x2c6   :  { %v488_v58 = vpack.c.bf16 %v413_v57, %v412_v56  ;;  %vm400_vm6 = vcmp.ge.f32.partialorder %v392_v54, 0.0  ;;  %vm401_vm7 = vcmp.ge.f32.partialorder %v393_v41, 0.0  ;;  %v406_v59 = vmul.f32 0.2, %v390_v52 }
 0x2c7   :  { %442 = vst [vmem:[%s740_s4] sm:$0xff] %v487_v40  ;;  %v407_v42 = vmul.f32 0.2, %v391_v53  ;;  %v408_v60 = vmul.f32 0.2, %v392_v54  ;;  %v409_v61 = vmul.f32 0.2, %v393_v41 }
 0x2c8   :  { %443 = vst [vmem:[%s740_s4 + $0x8] sm:$0xff] %v488_v58  ;;  %v414_v62 = vsel %vm398_vm4, %v390_v52, %v406_v59 }
 0x2c9   :  { %v415_v63 = vsel %vm399_vm5, %v391_v53, %v407_v42  ;;  %v416_v0 = vsel %vm400_vm6, %v392_v54, %v408_v60  ;;  %v417_v1 = vsel %vm401_vm7, %v393_v41, %v409_v61 }
 0x2ca   :  { %v489_v2 = vpack.c.bf16 %v415_v63, %v414_v62  ;;  %v490_v3 = vpack.c.bf16 %v417_v1, %v416_v0 }
 0x2cc   :  { %444 = vst [vmem:[%s740_s4 + $0x10] sm:$0xff] %v489_v2  ;;  %445 = vst [vmem:[%s740_s4 + $0x18] sm:$0xff] %v490_v3 }

// kernel: den_encoder_forward.7
= control target key start
LH: loop header
LB: loop body
LE: loop exit
PB: predicated region body
PF: predicated region fallthrough
CT: control target
= control target key end

     0   :  { %v479_v48 = vmov 0   ;;  %s615_s1 = inlined_call_operand.vmem [shape: bf16[256,128], index: 1, kind: input, shape index: {}]   ;;  %s616_s0 = inlined_call_operand.vmem [shape: bf16[32,256], index: 0, kind: input, shape index: {}]   ;;  %s617_s2 = inlined_call_operand.vmem [shape: f32[32,1], index: 2, kind: input, shape index: {}]   ;;  %s618_s3 = inlined_call_operand.vmem [shape: f32[32,1], index: 3, kind: input, shape index: {}]   ;;  %s619_s4 = inlined_call_operand.vmem [shape: bf16[32,128], index: 4, kind: output, shape index: {}]  }
   0x1   :  { %v449_v0 = vld [vmem:[%s615_s1 + $0x40] sm:$0xff]   ;;  %v451_v2 = vld [vmem:[%s615_s1 + $0x48] sm:$0xff]   ;;  %v453_v4 = vld [vmem:[%s615_s1 + $0x50] sm:$0xff]   ;;  %447 = vset.pattern.permute.xlu0 %v479_v48  ;;  %448 = vset.pattern.permute.xlu1 %v479_v48 }
   0x2   :  { %v450_v1 = vld [vmem:[%s615_s1] sm:$0xff]   ;;  %402 = vmatprep.subr.bf16.mxu0 %v449_v0  ;;  %430 = vmatprep.subr.bf16.mxu1 %v449_v0  ;;  %v452_v3 = vld [vmem:[%s615_s1 + $0x8] sm:$0xff]   ;;  %v454_v5 = vld [vmem:[%s615_s1 + $0x10] sm:$0xff]  }
   0x3   :  { %403 = vmatpush3.bf16.msra.mxu0 %v450_v1  ;;  %438 = vmatpush3.bf16.msra.mxu1 %v450_v1  ;;  %v455_v6 = vld [vmem:[%s615_s1 + $0x58] sm:$0xff]   ;;  %v457_v8 = vld [vmem:[%s615_s1 + $0x60] sm:$0xff]   ;;  %v459_v10 = vld [vmem:[%s615_s1 + $0x68] sm:$0xff]  }
   0x4   :  { %404 = vmatprep.subr.bf16.mxu0 %v451_v2  ;;  %431 = vmatprep.subr.bf16.mxu1 %v451_v2  ;;  %v456_v7 = vld [vmem:[%s615_s1 + $0x18] sm:$0xff]   ;;  %v458_v9 = vld [vmem:[%s615_s1 + $0x20] sm:$0xff]   ;;  %v460_v13 = vld [vmem:[%s615_s1 + $0x28] sm:$0xff]  }
   0x5   :  { %v467_v11 = vld [vmem:[%s616_s0 + $0x4] ss:$8 sps:$4 sm:$0xff]   ;;  %v470_v12 = vld [vmem:[%s616_s0 + $0x14] ss:$8 sps:$4 sm:$0xff]   ;;  %v465_v18 = vld [vmem:[%s616_s0] ss:$8 sps:$4 sm:$0xff]  }
   0x6   :  { %v461_v14 = vld [vmem:[%s615_s1 + $0x70] sm:$0xff]   ;;  %202 = vmatprep.mubr.bf16.mxu0 %v467_v11  ;;  %210 = vmatprep.mubr.bf16.mxu1 %v470_v12  ;;  %v463_v16 = vld [vmem:[%s615_s1 + $0x78] sm:$0xff]   ;;  %v251_v61 = vld [vmem:[%s617_s2] sm:$0xff] }
   0x7   :  { %405 = vmatpush3.bf16.msra.mxu0 %v452_v3  ;;  %439 = vmatpush3.bf16.msra.mxu1 %v452_v3  ;;  %v462_v15 = vld [vmem:[%s615_s1 + $0x30] sm:$0xff]   ;;  %v464_v17 = vld [vmem:[%s615_s1 + $0x38] sm:$0xff]  }
   0x8   :  { %406 = vmatprep.subr.bf16.mxu0 %v453_v4  ;;  %432 = vmatprep.subr.bf16.mxu1 %v453_v4  ;;  %v468_v19 = vld [vmem:[%s616_s0 + $0x10] ss:$8 sps:$4 sm:$0xff]   ;;  %v252_v4 = vld [vmem:[%s617_s2 + $0x8] sm:$0xff] }
   0x9   :  { %v253_v0 = vld [vmem:[%s617_s2 + $0x10] sm:$0xff] }
   0xb   :  { %407 = vmatpush3.bf16.msra.mxu0 %v454_v5  ;;  %440 = vmatpush3.bf16.msra.mxu1 %v454_v5 }
   0xc   :  { %408 = vmatprep.subr.bf16.mxu0 %v455_v6  ;;  %433 = vmatprep.subr.bf16.mxu1 %v455_v6 }
   0xf   :  { %409 = vmatpush3.bf16.msra.mxu0 %v456_v7  ;;  %441 = vmatpush3.bf16.msra.mxu1 %v456_v7  ;;  %v254_v7 = vld [vmem:[%s617_s2 + $0x18] sm:$0xff] }
  0x10   :  { %410 = vmatprep.subr.bf16.mxu0 %v457_v8  ;;  %434 = vmatprep.subr.bf16.mxu1 %v457_v8 }
  0x13   :  { %411 = vmatpush3.bf16.msra.mxu0 %v458_v9  ;;  %442 = vmatpush3.bf16.msra.mxu1 %v458_v9 }
  0x14   :  { %412 = vmatprep.subr.bf16.mxu0 %v459_v10  ;;  %435 = vmatprep.subr.bf16.mxu1 %v459_v10  ;;  %v267_v10 = vld [vmem:[%s618_s3] sm:$0xff] }
  0x17   :  { %413 = vmatpush3.bf16.msra.mxu0 %v460_v13  ;;  %443 = vmatpush3.bf16.msra.mxu1 %v460_v13  ;;  %v269_v13 = vld [vmem:[%s618_s3 + $0x10] sm:$0xff] }
  0x18   :  { %414 = vmatprep.subr.bf16.mxu0 %v461_v14  ;;  %436 = vmatprep.subr.bf16.mxu1 %v461_v14 }
  0x1b   :  { %415 = vmatpush3.bf16.msra.mxu0 %v462_v15  ;;  %444 = vmatpush3.bf16.msra.mxu1 %v462_v15 }
  0x1c   :  { %416 = vmatprep.subr.bf16.mxu0 %v463_v16  ;;  %437 = vmatprep.subr.bf16.mxu1 %v463_v16  ;;  %v268_v16 = vld [vmem:[%s618_s3 + $0x8] sm:$0xff] }
  0x1f   :  { %417 = vmatpush3.bf16.msra.mxu0 %v464_v17  ;;  %445 = vmatpush3.bf16.msra.mxu1 %v464_v17 }
  0x22   :  { %203 = vmatmul.mubr.bf16.vlgmr.msra.gmra.mrb[0].mxu0 %v465_v18  ;;  %211 = vmatmul.mubr.bf16.vlgmr.msra.gmra.mrb[0].mxu1 %v468_v19  ;;  %v270_v19 = vld [vmem:[%s618_s3 + $0x18] sm:$0xff] }
  0xf5   :  { %v418_v20 = vpop.f32.mrb[0].mxu0  ;;  %v424_v21 = vpop.f32.mrb[0].mxu1 }
  0xf6   :  { %v419_v22 = vpop.f32.mrb[1].mxu0  ;;  %v425_v23 = vpop.f32.mrb[1].mxu1 }
  0xf7   :  { %v565_v24 = vadd.f32 %v419_v22, %v418_v20  ;;  %v567_v25 = vadd.f32 %v425_v23, %v424_v21  ;;  %v421_v26 = vpop.f32.mrb[2].mxu0  ;;  %v427_v27 = vpop.f32.mrb[2].mxu1 }
  0xf8   :  { %v422_v28 = vpop.f32.mrb[3].mxu0  ;;  %v428_v29 = vpop.f32.mrb[3].mxu1 }
  0xf9   :  { %v569_v30 = vadd.f32 %v422_v28, %v421_v26  ;;  %v571_v31 = vadd.f32 %v428_v29, %v427_v27  ;;  %223 = vadd.xlane.f32.xlu1 %v567_v25  ;;  %219 = vadd.xlane.f32.xlu0 %v565_v24 }
  0xfd   :  { %225 = vadd.xlane.f32.xlu1 %v571_v31  ;;  %221 = vadd.xlane.f32.xlu0 %v569_v30 }
 0x186   :  { %v224_v32 = vpop.xlane.xlu1 %223  ;;  %v220_v33 = vpop.xlane.xlu0 %219 }
 0x187   :  { %v229_v34 = vmul.f32 0.0078125, %v224_v32  ;;  %v227_v35 = vmul.f32 0.0078125, %v220_v33 }
 0x189   :  { %v231_v36 = vsub.f32 %v565_v24, %v227_v35  ;;  %v233_v42 = vsub.f32 %v567_v25, %v229_v34 }
 0x18a   :  { %v226_v37 = vpop.xlane.xlu1 %225  ;;  %v222_v38 = vpop.xlane.xlu0 %221 }
 0x18b   :  { %v230_v39 = vmul.f32 0.0078125, %v226_v37  ;;  %v228_v40 = vmul.f32 0.0078125, %v222_v38  ;;  %v235_v41 = vmul.f32 %v231_v36, %v231_v36  ;;  %v237_v44 = vmul.f32 %v233_v42, %v233_v42 }
 0x18d   :  { %239 = vadd.xlane.f32.xlu0 %v235_v41  ;;  %v232_v43 = vsub.f32 %v569_v30, %v228_v40  ;;  %v234_v46 = vsub.f32 %v571_v31, %v230_v39 }
 0x18f   :  { %v236_v45 = vmul.f32 %v232_v43, %v232_v43  ;;  %v238_v47 = vmul.f32 %v234_v46, %v234_v46 }
 0x191   :  { %243 = vadd.xlane.f32.xlu0 %v237_v44  ;;  %241 = vadd.xlane.f32.xlu1 %v236_v45 }
 0x195   :  { %245 = vadd.xlane.f32.xlu1 %v238_v47 }
 0x21a   :  { %v240_v49 = vpop.xlane.xlu0 %239 }
 0x21b   :  { %v247_v50 = vmul.f32 0.0078125, %v240_v49 }
 0x21d   :  { %v255_v51 = vadd.f32 1e-05, %v247_v50 }
 0x21e   :  { %v242_v52 = vpop.xlane.xlu1 %241  ;;  %v244_v53 = vpop.xlane.xlu0 %243 }
 0x21f   :  { %471 = vrsqrt.f32 %v255_v51  ;;  %v248_v54 = vmul.f32 0.0078125, %v242_v52  ;;  %v249_v55 = vmul.f32 0.0078125, %v244_v53 }
 0x221   :  { %v257_v56 = vadd.f32 1e-05, %v249_v55  ;;  %v256_v57 = vadd.f32 1e-05, %v248_v54 }
 0x222   :  { %v246_v58 = vpop.xlane.xlu1 %245 }
 0x223   :  { %v250_v59 = vmul.f32 0.0078125, %v246_v58  ;;  %473 = vrsqrt.f32 %v257_v56 }
 0x224   :  { %475 = vrsqrt.f32 %v256_v57 }
 0x225   :  { %v258_v60 = vadd.f32 1e-05, %v250_v59 }
 0x227   :  { %477 = vrsqrt.f32 %v258_v60 }
 0x229   :  { %v472_v62 = vpop.eup %471 }
 0x22a   :  { %v263_v63 = vmul.f32 %v472_v62, %v251_v61 }
 0x22c   :  { %281 = vperm.xlu0 %447, %v263_v63   ;;  %v271_v9 = vmul.f32 %v263_v63, %v227_v35 }
 0x22d   :  { %v474_v1 = vpop.eup %473 }
 0x22e   :  { %v265_v2 = vmul.f32 %v474_v1, %v253_v0  ;;  %v476_v3 = vpop.eup %475  ;;  %v275_v11 = vsub.f32 %v267_v10, %v271_v9 }
 0x22f   :  { %v264_v5 = vmul.f32 %v476_v3, %v252_v4 }
 0x230   :  { %291 = vperm.xlu1 %448, %v265_v2   ;;  %v273_v12 = vmul.f32 %v265_v2, %v229_v34 }
 0x231   :  { %v478_v6 = vpop.eup %477  ;;  %v272_v15 = vmul.f32 %v264_v5, %v228_v40 }
 0x232   :  { %v266_v8 = vmul.f32 %v478_v6, %v254_v7  ;;  %v277_v14 = vsub.f32 %v269_v13, %v273_v12 }
 0x233   :  { %v276_v17 = vsub.f32 %v268_v16, %v272_v15 }
 0x234   :  { %286 = vperm.xlu1 %448, %v264_v5   ;;  %v274_v18 = vmul.f32 %v266_v8, %v230_v39 }
 0x236   :  { %v278_v20 = vsub.f32 %v270_v19, %v274_v18 }
 0x238   :  { %296 = vperm.xlu1 %448, %v266_v8  }
 0x23c   :  { %305 = vperm.xlu1 %448, %v275_v11  }
 0x240   :  { %315 = vperm.xlu1 %448, %v277_v14  }
 0x244   :  { %310 = vperm.xlu1 %448, %v276_v17  }
 0x248   :  { %320 = vperm.xlu1 %448, %v278_v20  }
 0x2ab   :  { %v282_v26 = vpop.permute.xlu0 %281 }
 0x2ac   :  { %v299_v28 = vmul.f32 %v565_v24, %v282_v26 }
 0x2af   :  { %v292_v21 = vpop.permute.xlu1 %291 }
 0x2b0   :  { %v301_v33 = vmul.f32 %v567_v25, %v292_v21 }
 0x2b3   :  { %v287_v22 = vpop.permute.xlu1 %286 }
 0x2b4   :  { %v300_v34 = vmul.f32 %v569_v30, %v287_v22 }
 0x2b7   :  { %v297_v23 = vpop.permute.xlu1 %296 }
 0x2b8   :  { %v302_v39 = vmul.f32 %v571_v31, %v297_v23 }
 0x2bb   :  { %v306_v27 = vpop.permute.xlu1 %305 }
 0x2bc   :  { %v323_v32 = vadd.f32 %v306_v27, %v299_v28 }
 0x2be   :  { %v331_v36 = vmul.f32 0.2, %v323_v32  ;;  %vm327_vm0 = vcmp.ge.f32.partialorder %v323_v32, 0.0 }
 0x2bf   :  { %v316_v29 = vpop.permute.xlu1 %315 }
 0x2c0   :  { %v325_v37 = vadd.f32 %v316_v29, %v301_v33  ;;  %v335_v42 = vsel %vm327_vm0, %v323_v32, %v331_v36 }
 0x2c2   :  { %v333_v43 = vmul.f32 0.2, %v325_v37  ;;  %vm329_vm2 = vcmp.ge.f32.partialorder %v325_v37, 0.0 }
 0x2c3   :  { %v311_v35 = vpop.permute.xlu1 %310 }
 0x2c4   :  { %v324_v38 = vadd.f32 %v311_v35, %v300_v34  ;;  %v337_v30 = vsel %vm329_vm2, %v325_v37, %v333_v43 }
 0x2c6   :  { %vm328_vm1 = vcmp.ge.f32.partialorder %v324_v38, 0.0  ;;  %v332_v40 = vmul.f32 0.2, %v324_v38 }
 0x2c7   :  { %v321_v41 = vpop.permute.xlu1 %320 }
 0x2c8   :  { %v336_v44 = vsel %vm328_vm1, %v324_v38, %v332_v40  ;;  %v326_v24 = vadd.f32 %v321_v41, %v302_v39 }
 0x2c9   :  { %v394_v45 = vpack.c.bf16 %v336_v44, %v335_v42 }
 0x2ca   :  { %vm330_vm3 = vcmp.ge.f32.partialorder %v326_v24, 0.0  ;;  %v334_v25 = vmul.f32 0.2, %v326_v24 }
 0x2cb   :  { %395 = vst [vmem:[%s619_s4] sm:$0xff] %v394_v45  }
 0x2cc   :  { %v338_v46 = vsel %vm330_vm3, %v326_v24, %v334_v25 }
 0x2cd   :  { %v399_v47 = vpack.c.bf16 %v338_v46, %v337_v30 }
 0x2cf   :  { %401 = vst [vmem:[%s619_s4 + $0x8] sm:$0xff] %v399_v47  }

// kernel: den_encoder_forward.8
= control target key start
LH: loop header
LB: loop body
LE: loop exit
PB: predicated region body
PF: predicated region fallthrough
CT: control target
= control target key end

     0   :  { %vm500_vm0 = vcmask 261120   ;;  %s1310_s1 = inlined_call_operand.vmem [shape: bf16[512,32], index: 1, kind: input, shape index: {}]   ;;  %s1311_s0 = inlined_call_operand.vmem [shape: bf16[64,512], index: 0, kind: input, shape index: {}]   ;;  %s1312_s2 = inlined_call_operand.vmem [shape: f32[64,1], index: 2, kind: input, shape index: {}]   ;;  %s1313_s3 = inlined_call_operand.vmem [shape: f32[64,1], index: 3, kind: input, shape index: {}]   ;;  %s1314_s4 = inlined_call_operand.vmem [shape: f32[64,32], index: 4, kind: output, shape index: {}]  }
   0x1   :  { %v900_v0 = vld [vmem:[%s1310_s1 + $0x40] sm:$0xff]   ;;  %v904_v4 = vld [vmem:[%s1310_s1 + $0x48] sm:$0xff]   ;;  %v908_v8 = vld [vmem:[%s1310_s1 + $0x50] sm:$0xff]  }
   0x2   :  { %v901_v1 = vld [vmem:[%s1310_s1 + $0xc0] sm:$0xff]   ;;  %817 = vmatprep.subr.bf16.mxu0 %v900_v0  ;;  %v905_v5 = vld [vmem:[%s1310_s1 + $0xc8] sm:$0xff]   ;;  %v909_v9 = vld [vmem:[%s1310_s1 + $0xd0] sm:$0xff]  }
   0x3   :  { %v902_v2 = vld [vmem:[%s1310_s1] sm:$0xff]   ;;  %857 = vmatprep.subr.bf16.mxu1 %v901_v1  ;;  %v906_v6 = vld [vmem:[%s1310_s1 + $0x8] sm:$0xff]   ;;  %v910_v10 = vld [vmem:[%s1310_s1 + $0x10] sm:$0xff]  }
   0x4   :  { %v903_v3 = vld [vmem:[%s1310_s1 + $0x80] sm:$0xff]   ;;  %818 = vmatpush3.bf16.msra.mxu0 %v902_v2  ;;  %v907_v7 = vld [vmem:[%s1310_s1 + $0x88] sm:$0xff]   ;;  %v911_v11 = vld [vmem:[%s1310_s1 + $0x90] sm:$0xff]  }
   0x5   :  { %858 = vmatpush3.bf16.msra.mxu1 %v903_v3  ;;  %819 = vmatprep.subr.bf16.mxu0 %v904_v4  ;;  %v912_v12 = vld [vmem:[%s1310_s1 + $0x58] sm:$0xff]   ;;  %v916_v16 = vld [vmem:[%s1310_s1 + $0x60] sm:$0xff]   ;;  %v920_v20 = vld [vmem:[%s1310_s1 + $0x68] sm:$0xff]  }
   0x6   :  { %859 = vmatprep.subr.bf16.mxu1 %v905_v5  ;;  %v913_v13 = vld [vmem:[%s1310_s1 + $0xd8] sm:$0xff]   ;;  %v917_v17 = vld [vmem:[%s1310_s1 + $0xe0] sm:$0xff]   ;;  %v921_v21 = vld [vmem:[%s1310_s1 + $0xe8] sm:$0xff]  }
   0x7   :  { %v914_v14 = vld [vmem:[%s1310_s1 + $0x18] sm:$0xff]   ;;  %v918_v18 = vld [vmem:[%s1310_s1 + $0x20] sm:$0xff]   ;;  %v922_v22 = vld [vmem:[%s1310_s1 + $0x28] sm:$0xff]  }
   0x8   :  { %820 = vmatpush3.bf16.msra.mxu0 %v906_v6  ;;  %v915_v15 = vld [vmem:[%s1310_s1 + $0x98] sm:$0xff]   ;;  %v919_v19 = vld [vmem:[%s1310_s1 + $0xa0] sm:$0xff]   ;;  %v923_v23 = vld [vmem:[%s1310_s1 + $0xa8] sm:$0xff]  }
   0x9   :  { %860 = vmatpush3.bf16.msra.mxu1 %v907_v7  ;;  %821 = vmatprep.subr.bf16.mxu0 %v908_v8  ;;  %v924_v24 = vld [vmem:[%s1310_s1 + $0x70] sm:$0xff]   ;;  %v928_v28 = vld [vmem:[%s1310_s1 + $0x78] sm:$0xff]  }
   0xa   :  { %861 = vmatprep.subr.bf16.mxu1 %v909_v9  ;;  %v925_v25 = vld [vmem:[%s1310_s1 + $0xf0] sm:$0xff]   ;;  %v929_v29 = vld [vmem:[%s1310_s1 + $0xf8] sm:$0xff]  }
   0xb   :  { %v926_v26 = vld [vmem:[%s1310_s1 + $0x30] sm:$0xff]   ;;  %v930_v30 = vld [vmem:[%s1310_s1 + $0x38] sm:$0xff]  }
   0xc   :  { %822 = vmatpush3.bf16.msra.mxu0 %v910_v10  ;;  %v927_v27 = vld [vmem:[%s1310_s1 + $0xb0] sm:$0xff]   ;;  %v931_v31 = vld [vmem:[%s1310_s1 + $0xb8] sm:$0xff]  }
   0xd   :  { %862 = vmatpush3.bf16.msra.mxu1 %v911_v11  ;;  %823 = vmatprep.subr.bf16.mxu0 %v912_v12  ;;  %v932_v32 = vld [vmem:[%s1311_s0] ss:$16 sps:$4 sm:$0xff]   ;;  %v934_v33 = vld [vmem:[%s1311_s0 + $0x4] ss:$16 sps:$4 sm:$0xff]   ;;  %v935_v34 = vld [vmem:[%s1311_s0 + $0x8] ss:$16 sps:$4 sm:$0xff]  }
   0xe   :  { %863 = vmatprep.subr.bf16.mxu1 %v913_v13  ;;  %v937_v35 = vld [vmem:[%s1311_s0 + $0xc] ss:$16 sps:$4 sm:$0xff]   ;;  %402 = vmatprep.mubr.bf16.mxu0 %v934_v33  ;;  %v938_v36 = vld [vmem:[%s1311_s0 + $0x24] ss:$16 sps:$4 sm:$0xff]   ;;  %v942_v38 = vld [vmem:[%s1311_s0 + $0x20] ss:$16 sps:$4 sm:$0xff]  }
   0xf   :  { %467 = vmatprep.mubr.bf16.mxu1 %v937_v35  ;;  %v940_v37 = vld [vmem:[%s1311_s0 + $0x2c] ss:$16 sps:$4 sm:$0xff]   ;;  %v943_v39 = vld [vmem:[%s1311_s0 + $0x28] ss:$16 sps:$4 sm:$0xff]   ;;  %v944_v40 = vld [vmem:[%s1311_s0 + $0x44] ss:$16 sps:$4 sm:$0xff]  }
  0x10   :  { %824 = vmatpush3.bf16.msra.mxu0 %v914_v14  ;;  %v946_v41 = vld [vmem:[%s1311_s0 + $0x4c] ss:$16 sps:$4 sm:$0xff]   ;;  %v948_v42 = vld [vmem:[%s1311_s0 + $0x40] ss:$16 sps:$4 sm:$0xff]   ;;  %v949_v43 = vld [vmem:[%s1311_s0 + $0x48] ss:$16 sps:$4 sm:$0xff]  }
  0x11   :  { %864 = vmatpush3.bf16.msra.mxu1 %v915_v15  ;;  %825 = vmatprep.subr.bf16.mxu0 %v916_v16  ;;  %v950_v44 = vld [vmem:[%s1311_s0 + $0x64] ss:$16 sps:$4 sm:$0xff]   ;;  %v952_v45 = vld [vmem:[%s1311_s0 + $0x6c] ss:$16 sps:$4 sm:$0xff]   ;;  %v954_v46 = vld [vmem:[%s1311_s0 + $0x60] ss:$16 sps:$4 sm:$0xff]  }
  0x12   :  { %865 = vmatprep.subr.bf16.mxu1 %v917_v17  ;;  %v955_v47 = vld [vmem:[%s1311_s0 + $0x68] ss:$16 sps:$4 sm:$0xff]  }
  0x14   :  { %826 = vmatpush3.bf16.msra.mxu0 %v918_v18 }
  0x15   :  { %866 = vmatpush3.bf16.msra.mxu1 %v919_v19  ;;  %827 = vmatprep.subr.bf16.mxu0 %v920_v20 }
  0x16   :  { %867 = vmatprep.subr.bf16.mxu1 %v921_v21 }
  0x18   :  { %828 = vmatpush3.bf16.msra.mxu0 %v922_v22 }
  0x19   :  { %868 = vmatpush3.bf16.msra.mxu1 %v923_v23  ;;  %829 = vmatprep.subr.bf16.mxu0 %v924_v24 }
  0x1a   :  { %869 = vmatprep.subr.bf16.mxu1 %v925_v25 }
  0x1c   :  { %830 = vmatpush3.bf16.msra.mxu0 %v926_v26 }
  0x1d   :  { %870 = vmatpush3.bf16.msra.mxu1 %v927_v27  ;;  %831 = vmatprep.subr.bf16.mxu0 %v928_v28 }
  0x1e   :  { %871 = vmatprep.subr.bf16.mxu1 %v929_v29 }
  0x20   :  { %832 = vmatpush3.bf16.msra.mxu0 %v930_v30 }
  0x21   :  { %872 = vmatpush3.bf16.msra.mxu1 %v931_v31 }
  0x23   :  { %403 = vmatmul.mubr.bf16.vlgmr.msra.gmra.mrb[0].mxu0 %v932_v32 }
  0x24   :  { %468 = vmatmul.mubr.bf16.vlgmr.msra.gmra.mrb[0].mxu1 %v935_v34  ;;  %410 = vmatprep.mubr.bf16.mxu0 %v938_v36 }
  0x25   :  { %475 = vmatprep.mubr.bf16.mxu1 %v940_v37 }
  0x2b   :  { %411 = vmatmul.mubr.bf16.gmra.mrb[4].mxu0 %v942_v38 }
  0x2c   :  { %476 = vmatmul.mubr.bf16.gmra.mrb[4].mxu1 %v943_v39  ;;  %418 = vmatprep.mubr.bf16.mxu0 %v944_v40 }
  0x2d   :  { %483 = vmatprep.mubr.bf16.mxu1 %v946_v41 }
  0x33   :  { %419 = vmatmul.mubr.bf16.gmra.mrb[8].mxu0 %v948_v42 }
  0x34   :  { %484 = vmatmul.mubr.bf16.gmra.mrb[8].mxu1 %v949_v43  ;;  %426 = vmatprep.mubr.bf16.mxu0 %v950_v44 }
  0x35   :  { %491 = vmatprep.mubr.bf16.mxu1 %v952_v45 }
  0x3b   :  { %427 = vmatmul.mubr.bf16.gmra.mrb[12].mxu0 %v954_v46 }
  0x3c   :  { %492 = vmatmul.mubr.bf16.gmra.mrb[12].mxu1 %v955_v47 }
  0xf6   :  { %v833_v48 = vpop.f32.mrb[0].mxu0 }
  0xf7   :  { %v873_v49 = vpop.f32.mrb[0].mxu1  ;;  %v834_v50 = vpop.f32.mrb[1].mxu0 }
  0xf8   :  { %v835_v51 = vadd.f32 %v834_v50, %v833_v48  ;;  %v874_v52 = vpop.f32.mrb[1].mxu1  ;;  %v836_v53 = vpop.f32.mrb[2].mxu0 }
  0xf9   :  { %v875_v54 = vadd.f32 %v874_v52, %v873_v49  ;;  %v876_v55 = vpop.f32.mrb[2].mxu1  ;;  %v837_v56 = vpop.f32.mrb[3].mxu0 }
  0xfa   :  { %v838_v57 = vadd.f32 %v837_v56, %v836_v53  ;;  %v877_v58 = vpop.f32.mrb[3].mxu1 }
  0xfb   :  { %v1142_v59 = vadd.f32 %v875_v54, %v835_v51  ;;  %v878_v60 = vadd.f32 %v877_v58, %v876_v55 }
  0xfd   :  { %v1144_v61 = vadd.f32 %v878_v60, %v838_v57  ;;  %v501_v62 = vsel %vm500_vm0, %v1142_v59, 0.0 }
  0xfe   :  { %502 = vadd.xlane.f32.xlu0 %v501_v62  ;;  %v839_v63 = vpop.f32.mrb[4].mxu0 }
  0xff   :  { %v879_v0 = vpop.f32.mrb[4].mxu1  ;;  %v840_v1 = vpop.f32.mrb[5].mxu0  ;;  %v504_v7 = vsel %vm500_vm0, %v1144_v61, 0.0 }
 0x100   :  { %v841_v2 = vadd.f32 %v840_v1, %v839_v63  ;;  %v880_v3 = vpop.f32.mrb[5].mxu1  ;;  %v842_v4 = vpop.f32.mrb[6].mxu0 }
 0x101   :  { %v881_v5 = vadd.f32 %v880_v3, %v879_v0  ;;  %v882_v6 = vpop.f32.mrb[6].mxu1  ;;  %v843_v8 = vpop.f32.mrb[7].mxu0 }
 0x102   :  { %505 = vadd.xlane.f32.xlu0 %v504_v7  ;;  %v844_v9 = vadd.f32 %v843_v8, %v842_v4  ;;  %v883_v10 = vpop.f32.mrb[7].mxu1 }
 0x103   :  { %v1150_v11 = vadd.f32 %v881_v5, %v841_v2  ;;  %v884_v12 = vadd.f32 %v883_v10, %v882_v6 }
 0x105   :  { %v1152_v13 = vadd.f32 %v884_v12, %v844_v9  ;;  %v507_v14 = vsel %vm500_vm0, %v1150_v11, 0.0 }
 0x106   :  { %508 = vadd.xlane.f32.xlu1 %v507_v14  ;;  %v845_v15 = vpop.f32.mrb[8].mxu0 }
 0x107   :  { %v885_v16 = vpop.f32.mrb[8].mxu1  ;;  %v846_v17 = vpop.f32.mrb[9].mxu0  ;;  %v510_v18 = vsel %vm500_vm0, %v1152_v13, 0.0 }
 0x108   :  { %v847_v19 = vadd.f32 %v846_v17, %v845_v15  ;;  %v886_v20 = vpop.f32.mrb[9].mxu1  ;;  %v848_v21 = vpop.f32.mrb[10].mxu0 }
 0x109   :  { %v887_v22 = vadd.f32 %v886_v20, %v885_v16  ;;  %v888_v23 = vpop.f32.mrb[10].mxu1  ;;  %v849_v24 = vpop.f32.mrb[11].mxu0 }
 0x10a   :  { %v850_v25 = vadd.f32 %v849_v24, %v848_v21  ;;  %v889_v26 = vpop.f32.mrb[11].mxu1  ;;  %511 = vadd.xlane.f32.xlu1 %v510_v18 }
 0x10b   :  { %v1158_v27 = vadd.f32 %v887_v22, %v847_v19  ;;  %v890_v28 = vadd.f32 %v889_v26, %v888_v23 }
 0x10d   :  { %v1160_v29 = vadd.f32 %v890_v28, %v850_v25  ;;  %v513_v30 = vsel %vm500_vm0, %v1158_v27, 0.0 }
 0x10e   :  { %514 = vadd.xlane.f32.xlu0 %v513_v30  ;;  %v851_v31 = vpop.f32.mrb[12].mxu0  ;;  %v972_v30 = vmov 0  }
 0x10f   :  { %v891_v32 = vpop.f32.mrb[12].mxu1  ;;  %v852_v33 = vpop.f32.mrb[13].mxu0  ;;  %v516_v34 = vsel %vm500_vm0, %v1160_v29, 0.0  ;;  %898 = vset.pattern.permute.xlu0 %v972_v30  ;;  %899 = vset.pattern.permute.xlu1 %v972_v30 }
 0x110   :  { %v853_v35 = vadd.f32 %v852_v33, %v851_v31  ;;  %v892_v36 = vpop.f32.mrb[13].mxu1  ;;  %517 = vadd.xlane.f32.xlu1 %v516_v34  ;;  %v854_v37 = vpop.f32.mrb[14].mxu0 }
 0x111   :  { %v893_v38 = vadd.f32 %v892_v36, %v891_v32  ;;  %v894_v39 = vpop.f32.mrb[14].mxu1  ;;  %v855_v40 = vpop.f32.mrb[15].mxu0 }
 0x112   :  { %v856_v41 = vadd.f32 %v855_v40, %v854_v37  ;;  %v895_v42 = vpop.f32.mrb[15].mxu1 }
 0x113   :  { %v1166_v43 = vadd.f32 %v893_v38, %v853_v35  ;;  %v896_v44 = vadd.f32 %v895_v42, %v894_v39  ;;  %v581_v42 = vld [vmem:[%s1312_s2] sm:$0xff] }
 0x115   :  { %v1168_v45 = vadd.f32 %v896_v44, %v856_v41  ;;  %v519_v46 = vsel %vm500_vm0, %v1166_v43, 0.0 }
 0x116   :  { %520 = vadd.xlane.f32.xlu0 %v519_v46 }
 0x117   :  { %v522_v47 = vsel %vm500_vm0, %v1168_v45, 0.0 }
 0x118   :  { %523 = vadd.xlane.f32.xlu1 %v522_v47 }
 0x18b   :  { %v503_v48 = vpop.xlane.xlu0 %502 }
 0x18c   :  { %v1174_v49 = vmul.f32 0.03125, %v503_v48 }
 0x18e   :  { %v533_v50 = vsub.f32 %v1142_v59, %v1174_v49 }
 0x18f   :  { %v506_v51 = vpop.xlane.xlu0 %505 }
 0x190   :  { %v1178_v52 = vmul.f32 0.03125, %v506_v51  ;;  %v541_v53 = vmul.f32 %v533_v50, %v533_v50  ;;  %v582_v50 = vld [vmem:[%s1312_s2 + $0x8] sm:$0xff] }
 0x192   :  { %v534_v54 = vsub.f32 %v1144_v61, %v1178_v52  ;;  %v549_v55 = vsel %vm500_vm0, %v541_v53, 0.0 }
 0x193   :  { %v509_v56 = vpop.xlane.xlu1 %508  ;;  %550 = vadd.xlane.f32.xlu0 %v549_v55 }
 0x194   :  { %v1183_v57 = vmul.f32 0.03125, %v509_v56  ;;  %v542_v58 = vmul.f32 %v534_v54, %v534_v54 }
 0x196   :  { %v535_v60 = vsub.f32 %v1150_v11, %v1183_v57  ;;  %v552_v62 = vsel %vm500_vm0, %v542_v58, 0.0 }
 0x197   :  { %v512_v63 = vpop.xlane.xlu1 %511  ;;  %553 = vadd.xlane.f32.xlu1 %v552_v62  ;;  %v614_v62 = vld [vmem:[%s1313_s3 + $0x8] sm:$0xff] }
 0x198   :  { %v1188_v0 = vmul.f32 0.03125, %v512_v63  ;;  %v543_v1 = vmul.f32 %v535_v60, %v535_v60  ;;  %v613_v63 = vld [vmem:[%s1313_s3] sm:$0xff] }
 0x19a   :  { %v536_v2 = vsub.f32 %v1152_v13, %v1188_v0  ;;  %v555_v3 = vsel %vm500_vm0, %v543_v1, 0.0 }
 0x19b   :  { %556 = vadd.xlane.f32.xlu0 %v555_v3  ;;  %v515_v4 = vpop.xlane.xlu0 %514 }
 0x19c   :  { %v1193_v5 = vmul.f32 0.03125, %v515_v4  ;;  %v544_v6 = vmul.f32 %v536_v2, %v536_v2 }
 0x19d   :  { %v518_v7 = vpop.xlane.xlu1 %517 }
 0x19e   :  { %v537_v8 = vsub.f32 %v1158_v27, %v1193_v5  ;;  %v1197_v9 = vmul.f32 0.03125, %v518_v7  ;;  %v558_v10 = vsel %vm500_vm0, %v544_v6, 0.0  ;;  %v584_v7 = vld [vmem:[%s1312_s2 + $0x18] sm:$0xff] }
 0x19f   :  { %559 = vadd.xlane.f32.xlu1 %v558_v10 }
 0x1a0   :  { %v538_v12 = vsub.f32 %v1160_v29, %v1197_v9  ;;  %v545_v14 = vmul.f32 %v537_v8, %v537_v8 }
 0x1a2   :  { %v561_v15 = vsel %vm500_vm0, %v545_v14, 0.0  ;;  %v546_v16 = vmul.f32 %v538_v12, %v538_v12 }
 0x1a3   :  { %562 = vadd.xlane.f32.xlu0 %v561_v15  ;;  %v521_v17 = vpop.xlane.xlu0 %520 }
 0x1a4   :  { %v1203_v18 = vmul.f32 0.03125, %v521_v17  ;;  %v564_v19 = vsel %vm500_vm0, %v546_v16, 0.0  ;;  %v616_v17 = vld [vmem:[%s1313_s3 + $0x18] sm:$0xff] }
 0x1a5   :  { %v524_v20 = vpop.xlane.xlu1 %523  ;;  %565 = vadd.xlane.f32.xlu1 %v564_v19 }
 0x1a6   :  { %v539_v21 = vsub.f32 %v1166_v43, %v1203_v18  ;;  %v1208_v22 = vmul.f32 0.03125, %v524_v20 }
 0x1a8   :  { %v540_v23 = vsub.f32 %v1168_v45, %v1208_v22  ;;  %v547_v24 = vmul.f32 %v539_v21, %v539_v21  ;;  %v586_v21 = vld [vmem:[%s1312_s2 + $0x28] sm:$0xff] }
 0x1aa   :  { %v567_v25 = vsel %vm500_vm0, %v547_v24, 0.0  ;;  %v548_v26 = vmul.f32 %v540_v23, %v540_v23 }
 0x1ab   :  { %568 = vadd.xlane.f32.xlu0 %v567_v25 }
 0x1ac   :  { %v570_v28 = vsel %vm500_vm0, %v548_v26, 0.0  ;;  %v615_v26 = vld [vmem:[%s1313_s3 + $0x10] sm:$0xff] }
 0x1ad   :  { %571 = vadd.xlane.f32.xlu1 %v570_v28 }
 0x220   :  { %v551_v31 = vpop.xlane.xlu0 %550 }
 0x221   :  { %v573_v32 = vmul.f32 0.03125, %v551_v31 }
 0x223   :  { %v589_v33 = vadd.f32 1e-05, %v573_v32 }
 0x224   :  { %v554_v34 = vpop.xlane.xlu1 %553 }
 0x225   :  { %956 = vrsqrt.f32 %v589_v33  ;;  %v574_v35 = vmul.f32 0.03125, %v554_v34 }
 0x227   :  { %v590_v36 = vadd.f32 1e-05, %v574_v35  ;;  %v588_v35 = vld [vmem:[%s1312_s2 + $0x38] sm:$0xff] }
 0x228   :  { %v557_v37 = vpop.xlane.xlu0 %556 }
 0x229   :  { %958 = vrsqrt.f32 %v590_v36  ;;  %v575_v38 = vmul.f32 0.03125, %v557_v37 }
 0x22b   :  { %v591_v39 = vadd.f32 1e-05, %v575_v38 }
 0x22c   :  { %v560_v40 = vpop.xlane.xlu1 %559 }
 0x22d   :  { %v576_v41 = vmul.f32 0.03125, %v560_v40  ;;  %960 = vrsqrt.f32 %v591_v39 }
 0x22f   :  { %v957_v44 = vpop.eup %956  ;;  %v592_v46 = vadd.f32 1e-05, %v576_v41  ;;  %v617_v41 = vld [vmem:[%s1313_s3 + $0x20] sm:$0xff] }
 0x230   :  { %v563_v47 = vpop.xlane.xlu0 %562  ;;  %v605_v48 = vmul.f32 %v957_v44, %v581_v42 }
 0x231   :  { %962 = vrsqrt.f32 %v592_v46  ;;  %v577_v54 = vmul.f32 0.03125, %v563_v47  ;;  %v587_v47 = vld [vmem:[%s1312_s2 + $0x30] sm:$0xff] }
 0x232   :  { %v566_v51 = vpop.xlane.xlu1 %565  ;;  %639 = vperm.xlu0 %898, %v605_v48   ;;  %v621_v58 = vmul.f32 %v605_v48, %v1174_v49  ;;  %v583_v49 = vld [vmem:[%s1312_s2 + $0x10] sm:$0xff] }
 0x233   :  { %v959_v53 = vpop.eup %958  ;;  %v578_v55 = vmul.f32 0.03125, %v566_v51  ;;  %v593_v2 = vadd.f32 1e-05, %v577_v54 }
 0x234   :  { %v606_v56 = vmul.f32 %v959_v53, %v582_v50  ;;  %v629_v4 = vsub.f32 %v613_v63, %v621_v58 }
 0x235   :  { %v594_v60 = vadd.f32 1e-05, %v578_v55 }
 0x236   :  { %644 = vperm.xlu1 %899, %v606_v56   ;;  %v622_v1 = vmul.f32 %v606_v56, %v1178_v52 }
 0x237   :  { %964 = vrsqrt.f32 %v594_v60  ;;  %v961_v6 = vpop.eup %960 }
 0x238   :  { %v630_v3 = vsub.f32 %v614_v62, %v622_v1  ;;  %966 = vrsqrt.f32 %v593_v2  ;;  %v569_v52 = vpop.xlane.xlu0 %568  ;;  %v607_v14 = vmul.f32 %v961_v6, %v583_v49 }
 0x239   :  { %v579_v20 = vmul.f32 0.03125, %v569_v52 }
 0x23a   :  { %v572_v8 = vpop.xlane.xlu1 %571  ;;  %692 = vperm.xlu0 %898, %v630_v3   ;;  %687 = vperm.xlu1 %899, %v629_v4   ;;  %v623_v24 = vmul.f32 %v607_v14, %v1183_v57  ;;  %v585_v57 = vld [vmem:[%s1312_s2 + $0x20] sm:$0xff] }
 0x23b   :  { %v963_v10 = vpop.eup %962  ;;  %v580_v12 = vmul.f32 0.03125, %v572_v8  ;;  %v595_v30 = vadd.f32 1e-05, %v579_v20 }
 0x23c   :  { %v608_v15 = vmul.f32 %v963_v10, %v584_v7  ;;  %v631_v31 = vsub.f32 %v615_v26, %v623_v24 }
 0x23d   :  { %v596_v16 = vadd.f32 1e-05, %v580_v12 }
 0x23e   :  { %649 = vperm.xlu1 %899, %v607_v14   ;;  %v624_v19 = vmul.f32 %v608_v15, %v1188_v0  ;;  %v618_v0 = vld [vmem:[%s1313_s3 + $0x28] sm:$0xff] }
 0x23f   :  { %968 = vrsqrt.f32 %v596_v16 }
 0x240   :  { %v632_v23 = vsub.f32 %v616_v17, %v624_v19  ;;  %970 = vrsqrt.f32 %v595_v30 }
 0x241   :  { %v965_v25 = vpop.eup %964 }
 0x242   :  { %702 = vperm.xlu0 %898, %v632_v23   ;;  %654 = vperm.xlu1 %899, %v608_v15   ;;  %v610_v28 = vmul.f32 %v965_v25, %v586_v21  ;;  %v967_v33 = vpop.eup %966 }
 0x243   :  { %v609_v36 = vmul.f32 %v967_v33, %v585_v57 }
 0x244   :  { %v626_v32 = vmul.f32 %v610_v28, %v1197_v9  ;;  %v620_v9 = vld [vmem:[%s1313_s3 + $0x38] sm:$0xff] }
 0x245   :  { %v625_v40 = vmul.f32 %v609_v36, %v1193_v5  ;;  %v619_v5 = vld [vmem:[%s1313_s3 + $0x30] sm:$0xff] }
 0x246   :  { %697 = vperm.xlu1 %899, %v631_v31   ;;  %v634_v34 = vsub.f32 %v618_v0, %v626_v32 }
 0x247   :  { %v633_v44 = vsub.f32 %v617_v41, %v625_v40 }
 0x248   :  { %712 = vperm.xlu0 %898, %v634_v34  }
 0x249   :  { %v969_v37 = vpop.eup %968 }
 0x24a   :  { %659 = vperm.xlu1 %899, %v609_v36   ;;  %v612_v38 = vmul.f32 %v969_v37, %v588_v35  ;;  %v971_v46 = vpop.eup %970 }
 0x24b   :  { %v611_v48 = vmul.f32 %v971_v46, %v587_v47 }
 0x24c   :  { %v628_v39 = vmul.f32 %v612_v38, %v1208_v22 }
 0x24d   :  { %v627_v22 = vmul.f32 %v611_v48, %v1203_v18 }
 0x24e   :  { %664 = vperm.xlu1 %899, %v610_v28   ;;  %v636_v42 = vsub.f32 %v620_v9, %v628_v39 }
 0x24f   :  { %v635_v50 = vsub.f32 %v619_v5, %v627_v22 }
 0x250   :  { %722 = vperm.xlu0 %898, %v636_v42  }
 0x252   :  { %707 = vperm.xlu1 %899, %v633_v44  }
 0x256   :  { %669 = vperm.xlu1 %899, %v611_v48  }
 0x25a   :  { %674 = vperm.xlu1 %899, %v612_v38  }
 0x25e   :  { %717 = vperm.xlu1 %899, %v635_v50  }
 0x2b1   :  { %v640_v51 = vpop.permute.xlu0 %639 }
 0x2b2   :  { %v677_v54 = vmul.f32 %v640_v51, %v1142_v59 }
 0x2b5   :  { %v645_v53 = vpop.permute.xlu1 %644 }
 0x2b6   :  { %v678_v55 = vmul.f32 %v645_v53, %v1144_v61 }
 0x2b9   :  { %v688_v56 = vpop.permute.xlu1 %687  ;;  %v693_v58 = vpop.permute.xlu0 %692 }
 0x2ba   :  { %v725_v60 = vadd.f32 %v688_v56, %v677_v54  ;;  %v726_v62 = vadd.f32 %v693_v58, %v678_v55 }
 0x2bc   :  { %vm733_vm1 = vcmp.ge.f32.partialorder %v725_v60, 0.0  ;;  %v741_v63 = vmul.f32 0.2, %v725_v60  ;;  %vm734_vm2 = vcmp.ge.f32.partialorder %v726_v62, 0.0  ;;  %v742_v18 = vmul.f32 0.2, %v726_v62 }
 0x2bd   :  { %v650_v1 = vpop.permute.xlu1 %649 }
 0x2be   :  { %v749_v2 = vsel %vm733_vm1, %v725_v60, %v741_v63  ;;  %v750_v3 = vsel %vm734_vm2, %v726_v62, %v742_v18  ;;  %v679_v6 = vmul.f32 %v650_v1, %v1150_v11 }
 0x2bf   :  { %757 = vst.msk [vmem:[%s1314_s4] sm:$0xff] %vm500_vm0, %v749_v2  ;;  %758 = vst.msk [vmem:[%s1314_s4 + $0x8] sm:$0xff] %vm500_vm0, %v750_v3 }
 0x2c1   :  { %v655_v59 = vpop.permute.xlu1 %654  ;;  %v703_v4 = vpop.permute.xlu0 %702 }
 0x2c2   :  { %v680_v61 = vmul.f32 %v655_v59, %v1152_v13 }
 0x2c4   :  { %v728_v49 = vadd.f32 %v703_v4, %v680_v61 }
 0x2c5   :  { %v698_v7 = vpop.permute.xlu1 %697 }
 0x2c6   :  { %vm736_vm3 = vcmp.ge.f32.partialorder %v728_v49, 0.0  ;;  %v744_v8 = vmul.f32 0.2, %v728_v49  ;;  %v727_v10 = vadd.f32 %v698_v7, %v679_v6 }
 0x2c7   :  { %v713_v16 = vpop.permute.xlu0 %712 }
 0x2c8   :  { %v752_v12 = vsel %vm736_vm3, %v728_v49, %v744_v8  ;;  %vm735_vm4 = vcmp.ge.f32.partialorder %v727_v10, 0.0  ;;  %v743_v52 = vmul.f32 0.2, %v727_v10 }
 0x2c9   :  { %760 = vst.msk [vmem:[%s1314_s4 + $0x18] sm:$0xff] %vm500_vm0, %v752_v12  ;;  %v660_v14 = vpop.permute.xlu1 %659 }
 0x2ca   :  { %v751_v15 = vsel %vm735_vm4, %v727_v10, %v743_v52  ;;  %v681_v17 = vmul.f32 %v660_v14, %v1158_v27 }
 0x2cb   :  { %759 = vst.msk [vmem:[%s1314_s4 + $0x10] sm:$0xff] %vm500_vm0, %v751_v15 }
 0x2cd   :  { %v665_v11 = vpop.permute.xlu1 %664 }
 0x2ce   :  { %v682_v13 = vmul.f32 %v665_v11, %v1160_v29 }
 0x2cf   :  { %v723_v30 = vpop.permute.xlu0 %722 }
 0x2d0   :  { %v730_v19 = vadd.f32 %v713_v16, %v682_v13 }
 0x2d1   :  { %v708_v20 = vpop.permute.xlu1 %707 }
 0x2d2   :  { %vm738_vm5 = vcmp.ge.f32.partialorder %v730_v19, 0.0  ;;  %v746_v21 = vmul.f32 0.2, %v730_v19  ;;  %v729_v23 = vadd.f32 %v708_v20, %v681_v17 }
 0x2d4   :  { %v754_v24 = vsel %vm738_vm5, %v730_v19, %v746_v21  ;;  %vm737_vm6 = vcmp.ge.f32.partialorder %v729_v23, 0.0  ;;  %v745_v25 = vmul.f32 0.2, %v729_v23 }
 0x2d5   :  { %762 = vst.msk [vmem:[%s1314_s4 + $0x28] sm:$0xff] %vm500_vm0, %v754_v24  ;;  %v670_v26 = vpop.permute.xlu1 %669 }
 0x2d6   :  { %v753_v28 = vsel %vm737_vm6, %v729_v23, %v745_v25  ;;  %v683_v0 = vmul.f32 %v670_v26, %v1166_v43 }
 0x2d7   :  { %761 = vst.msk [vmem:[%s1314_s4 + $0x20] sm:$0xff] %vm500_vm0, %v753_v28 }
 0x2d9   :  { %v675_v27 = vpop.permute.xlu1 %674 }
 0x2da   :  { %v684_v29 = vmul.f32 %v675_v27, %v1168_v45 }
 0x2dc   :  { %v732_v31 = vadd.f32 %v723_v30, %v684_v29 }
 0x2dd   :  { %v718_v32 = vpop.permute.xlu1 %717 }
 0x2de   :  { %vm740_vm7 = vcmp.ge.f32.partialorder %v732_v31, 0.0  ;;  %v748_v33 = vmul.f32 0.2, %v732_v31  ;;  %v731_v57 = vadd.f32 %v718_v32, %v683_v0 }
 0x2e0   :  { %v756_v34 = vsel %vm740_vm7, %v732_v31, %v748_v33  ;;  %vm739_vm8 = vcmp.ge.f32.partialorder %v731_v57, 0.0  ;;  %v747_v35 = vmul.f32 0.2, %v731_v57 }
 0x2e1   :  { %764 = vst.msk [vmem:[%s1314_s4 + $0x38] sm:$0xff] %vm500_vm0, %v756_v34 }
 0x2e2   :  { %v755_v36 = vsel %vm739_vm8, %v731_v57, %v747_v35 }
 0x2e3   :  { %763 = vst.msk [vmem:[%s1314_s4 + $0x30] sm:$0xff] %vm500_vm0, %v755_v36 }

// kernel: den_encoder_forward.9
= control target key start
LH: loop header
LB: loop body
LE: loop exit
PB: predicated region body
PF: predicated region fallthrough
CT: control target
= control target key end

     0   :  { %v759_v3 = vmov 0   ;;  %vm470_vm0 = vcmask 15360   ;;  %s1224_s1 = inlined_call_operand.vmem [shape: f32[1024,2], index: 1, kind: input, shape index: {}]   ;;  %s1225_s0 = inlined_call_operand.vmem [shape: f32[16,1024], index: 0, kind: input, shape index: {}]   ;;  %s1226_s2 = inlined_call_operand.vmem [shape: f32[16,1], index: 2, kind: input, shape index: {}]   ;;  %s1227_s3 = inlined_call_operand.vmem [shape: f32[16,2], index: 3, kind: output, shape index: {}]  }
   0x1   :  { %v46_v0 = vld [vmem:[%s1224_s1 + $0x80] sm:$0xff]  ;;  %v47_v1 = vld [vmem:[%s1224_s1 + $0x88] sm:$0xff]  ;;  %758 = vset.pattern.permute.xlu0 %v759_v3  ;;  %v48_v12 = vld [vmem:[%s1224_s1 + $0x90] sm:$0xff] }
   0x2   :  { %v30_v2 = vld [vmem:[%s1224_s1] sm:$0xff]  ;;  %v629_v4 = vpack.c.bf16 %v47_v1, %v46_v0  ;;  %v31_v5 = vld [vmem:[%s1224_s1 + $0x8] sm:$0xff]  ;;  %v49_v14 = vld [vmem:[%s1224_s1 + $0x98] sm:$0xff] }
   0x3   :  { %v78_v6 = vld [vmem:[%s1224_s1 + $0x180] sm:$0xff]  ;;  %v79_v7 = vld [vmem:[%s1224_s1 + $0x188] sm:$0xff]  ;;  %v631_v8 = vpack.c.bf16 %v31_v5, %v30_v2  ;;  %v32_v15 = vld [vmem:[%s1224_s1 + $0x10] sm:$0xff]  ;;  %v633_v17 = vpack.c.bf16 %v49_v14, %v48_v12 }
   0x4   :  { %v661_v9 = vpack.c.bf16 %v79_v7, %v78_v6  ;;  %v62_v10 = vld [vmem:[%s1224_s1 + $0x100] sm:$0xff]  ;;  %v63_v11 = vld [vmem:[%s1224_s1 + $0x108] sm:$0xff]  ;;  %630 = vmatprep.subr.bf16.mxu0 %v629_v4  ;;  %v33_v16 = vld [vmem:[%s1224_s1 + $0x18] sm:$0xff] }
   0x5   :  { %v663_v13 = vpack.c.bf16 %v63_v11, %v62_v10  ;;  %632 = vmatpush3.bf16.msra.mxu0 %v631_v8  ;;  %v635_v18 = vpack.c.bf16 %v33_v16, %v32_v15  ;;  %v80_v19 = vld [vmem:[%s1224_s1 + $0x190] sm:$0xff]  ;;  %v81_v20 = vld [vmem:[%s1224_s1 + $0x198] sm:$0xff]  ;;  %v50_v24 = vld [vmem:[%s1224_s1 + $0xa0] sm:$0xff] }
   0x6   :  { %662 = vmatprep.subr.bf16.mxu1 %v661_v9  ;;  %v64_v21 = vld [vmem:[%s1224_s1 + $0x110] sm:$0xff]  ;;  %v665_v22 = vpack.c.bf16 %v81_v20, %v80_v19  ;;  %v65_v23 = vld [vmem:[%s1224_s1 + $0x118] sm:$0xff]  ;;  %v51_v25 = vld [vmem:[%s1224_s1 + $0xa8] sm:$0xff]  ;;  %634 = vmatprep.subr.bf16.mxu0 %v633_v17 }
   0x7   :  { %664 = vmatpush3.bf16.msra.mxu1 %v663_v13  ;;  %v667_v26 = vpack.c.bf16 %v65_v23, %v64_v21  ;;  %v637_v27 = vpack.c.bf16 %v51_v25, %v50_v24  ;;  %v34_v28 = vld [vmem:[%s1224_s1 + $0x20] sm:$0xff]  ;;  %v35_v29 = vld [vmem:[%s1224_s1 + $0x28] sm:$0xff]  ;;  %v52_v36 = vld [vmem:[%s1224_s1 + $0xb0] sm:$0xff] }
   0x8   :  { %v82_v30 = vld [vmem:[%s1224_s1 + $0x1a0] sm:$0xff]  ;;  %666 = vmatprep.subr.bf16.mxu1 %v665_v22  ;;  %v83_v31 = vld [vmem:[%s1224_s1 + $0x1a8] sm:$0xff]  ;;  %v639_v34 = vpack.c.bf16 %v35_v29, %v34_v28  ;;  %v53_v37 = vld [vmem:[%s1224_s1 + $0xb8] sm:$0xff] }
   0x9   :  { %v66_v32 = vld [vmem:[%s1224_s1 + $0x120] sm:$0xff]  ;;  %v67_v33 = vld [vmem:[%s1224_s1 + $0x128] sm:$0xff]  ;;  %636 = vmatpush3.bf16.msra.mxu0 %v635_v18  ;;  %v669_v35 = vpack.c.bf16 %v83_v31, %v82_v30  ;;  %v36_v38 = vld [vmem:[%s1224_s1 + $0x30] sm:$0xff]  ;;  %v641_v40 = vpack.c.bf16 %v53_v37, %v52_v36 }
   0xa   :  { %638 = vmatprep.subr.bf16.mxu0 %v637_v27  ;;  %v671_v39 = vpack.c.bf16 %v67_v33, %v66_v32  ;;  %v37_v41 = vld [vmem:[%s1224_s1 + $0x38] sm:$0xff]  ;;  %v84_v42 = vld [vmem:[%s1224_s1 + $0x1b0] sm:$0xff]  ;;  %v54_v47 = vld [vmem:[%s1224_s1 + $0xc0] sm:$0xff] }
   0xb   :  { %668 = vmatpush3.bf16.msra.mxu1 %v667_v26  ;;  %v85_v43 = vld [vmem:[%s1224_s1 + $0x1b8] sm:$0xff]  ;;  %v68_v45 = vld [vmem:[%s1224_s1 + $0x130] sm:$0xff]  ;;  %v55_v48 = vld [vmem:[%s1224_s1 + $0xc8] sm:$0xff]  ;;  %v643_v49 = vpack.c.bf16 %v37_v41, %v36_v38 }
   0xc   :  { %670 = vmatprep.subr.bf16.mxu1 %v669_v35  ;;  %v673_v44 = vpack.c.bf16 %v85_v43, %v84_v42  ;;  %v69_v46 = vld [vmem:[%s1224_s1 + $0x138] sm:$0xff]  ;;  %v86_v50 = vld [vmem:[%s1224_s1 + $0x1c0] sm:$0xff]  ;;  %v87_v51 = vld [vmem:[%s1224_s1 + $0x1c8] sm:$0xff]  ;;  %v645_v53 = vpack.c.bf16 %v55_v48, %v54_v47 }
   0xd   :  { %640 = vmatpush3.bf16.msra.mxu0 %v639_v34  ;;  %v675_v52 = vpack.c.bf16 %v69_v46, %v68_v45  ;;  %v38_v54 = vld [vmem:[%s1224_s1 + $0x40] sm:$0xff]  ;;  %v39_v55 = vld [vmem:[%s1224_s1 + $0x48] sm:$0xff]  ;;  %v677_v57 = vpack.c.bf16 %v87_v51, %v86_v50  ;;  %v56_v59 = vld [vmem:[%s1224_s1 + $0xd0] sm:$0xff] }
   0xe   :  { %642 = vmatprep.subr.bf16.mxu0 %v641_v40  ;;  %v70_v56 = vld [vmem:[%s1224_s1 + $0x140] sm:$0xff]  ;;  %v71_v58 = vld [vmem:[%s1224_s1 + $0x148] sm:$0xff]  ;;  %v57_v60 = vld [vmem:[%s1224_s1 + $0xd8] sm:$0xff]  ;;  %v647_v63 = vpack.c.bf16 %v39_v55, %v38_v54 }
   0xf   :  { %672 = vmatpush3.bf16.msra.mxu1 %v671_v39  ;;  %v88_v61 = vld [vmem:[%s1224_s1 + $0x1d0] sm:$0xff]  ;;  %v89_v62 = vld [vmem:[%s1224_s1 + $0x1d8] sm:$0xff]  ;;  %v679_v0 = vpack.c.bf16 %v71_v58, %v70_v56  ;;  %v649_v1 = vpack.c.bf16 %v57_v60, %v56_v59  ;;  %v58_v7 = vld [vmem:[%s1224_s1 + $0xe0] sm:$0xff] }
  0x10   :  { %674 = vmatprep.subr.bf16.mxu1 %v673_v44  ;;  %v40_v2 = vld [vmem:[%s1224_s1 + $0x50] sm:$0xff]  ;;  %v41_v3 = vld [vmem:[%s1224_s1 + $0x58] sm:$0xff]  ;;  %v681_v5 = vpack.c.bf16 %v89_v62, %v88_v61  ;;  %v59_v8 = vld [vmem:[%s1224_s1 + $0xe8] sm:$0xff] }
  0x11   :  { %644 = vmatpush3.bf16.msra.mxu0 %v643_v49  ;;  %v72_v4 = vld [vmem:[%s1224_s1 + $0x150] sm:$0xff]  ;;  %v73_v6 = vld [vmem:[%s1224_s1 + $0x158] sm:$0xff]  ;;  %v90_v9 = vld [vmem:[%s1224_s1 + $0x1e0] sm:$0xff]  ;;  %v651_v11 = vpack.c.bf16 %v41_v3, %v40_v2  ;;  %v653_v15 = vpack.c.bf16 %v59_v8, %v58_v7 }
  0x12   :  { %646 = vmatprep.subr.bf16.mxu0 %v645_v53  ;;  %v91_v10 = vld [vmem:[%s1224_s1 + $0x1e8] sm:$0xff]  ;;  %v42_v12 = vld [vmem:[%s1224_s1 + $0x60] sm:$0xff]  ;;  %v683_v14 = vpack.c.bf16 %v73_v6, %v72_v4  ;;  %v60_v20 = vld [vmem:[%s1224_s1 + $0xf0] sm:$0xff] }
  0x13   :  { %676 = vmatpush3.bf16.msra.mxu1 %v675_v52  ;;  %v43_v13 = vld [vmem:[%s1224_s1 + $0x68] sm:$0xff]  ;;  %v74_v16 = vld [vmem:[%s1224_s1 + $0x160] sm:$0xff]  ;;  %v685_v19 = vpack.c.bf16 %v91_v10, %v90_v9  ;;  %v61_v21 = vld [vmem:[%s1224_s1 + $0xf8] sm:$0xff] }
  0x14   :  { %678 = vmatprep.subr.bf16.mxu1 %v677_v57  ;;  %v75_v17 = vld [vmem:[%s1224_s1 + $0x168] sm:$0xff]  ;;  %v17_v22 = vld [vmem:[%s1225_s0 + $0x18] sm:$0xff]  ;;  %v92_v23 = vld [vmem:[%s1224_s1 + $0x1f0] sm:$0xff]  ;;  %v655_v25 = vpack.c.bf16 %v43_v13, %v42_v12  ;;  %v657_v27 = vpack.c.bf16 %v61_v21, %v60_v20 }
  0x15   :  { %648 = vmatpush3.bf16.msra.mxu0 %v647_v63  ;;  %v15_v18 = vld [vmem:[%s1225_s0 + $0x8] sm:$0xff]  ;;  %v93_v24 = vld [vmem:[%s1224_s1 + $0x1f8] sm:$0xff]  ;;  %309 = vmatprep.mubr.f32.mxu1 %v17_v22  ;;  %v687_v26 = vpack.c.bf16 %v75_v17, %v74_v16  ;;  %v44_v28 = vld [vmem:[%s1224_s1 + $0x70] sm:$0xff] }
  0x16   :  { %650 = vmatprep.subr.bf16.mxu0 %v649_v1  ;;  %234 = vmatprep.mubr.f32.mxu0 %v15_v18  ;;  %v45_v29 = vld [vmem:[%s1224_s1 + $0x78] sm:$0xff]  ;;  %v76_v30 = vld [vmem:[%s1224_s1 + $0x170] sm:$0xff]  ;;  %v689_v31 = vpack.c.bf16 %v93_v24, %v92_v23  ;;  %v110_v33 = vld [vmem:[%s1224_s1 + $0x280] sm:$0xff] }
  0x17   :  { %680 = vmatpush3.bf16.msra.mxu1 %v679_v0  ;;  %v77_v32 = vld [vmem:[%s1224_s1 + $0x178] sm:$0xff]  ;;  %v111_v34 = vld [vmem:[%s1224_s1 + $0x288] sm:$0xff]  ;;  %v142_v35 = vld [vmem:[%s1224_s1 + $0x380] sm:$0xff]  ;;  %v659_v37 = vpack.c.bf16 %v45_v29, %v44_v28 }
  0x18   :  { %682 = vmatprep.subr.bf16.mxu1 %v681_v5  ;;  %v143_v36 = vld [vmem:[%s1224_s1 + $0x388] sm:$0xff]  ;;  %v691_v38 = vpack.c.bf16 %v77_v32, %v76_v30  ;;  %v693_v39 = vpack.c.bf16 %v111_v34, %v110_v33  ;;  %v94_v40 = vld [vmem:[%s1224_s1 + $0x200] sm:$0xff]  ;;  %v112_v45 = vld [vmem:[%s1224_s1 + $0x290] sm:$0xff] }
  0x19   :  { %652 = vmatpush3.bf16.msra.mxu0 %v651_v11  ;;  %v95_v41 = vld [vmem:[%s1224_s1 + $0x208] sm:$0xff]  ;;  %v126_v42 = vld [vmem:[%s1224_s1 + $0x300] sm:$0xff]  ;;  %v725_v43 = vpack.c.bf16 %v143_v36, %v142_v35  ;;  %v113_v46 = vld [vmem:[%s1224_s1 + $0x298] sm:$0xff] }
  0x1a   :  { %654 = vmatprep.subr.bf16.mxu0 %v653_v15  ;;  %v127_v44 = vld [vmem:[%s1224_s1 + $0x308] sm:$0xff]  ;;  %v144_v47 = vld [vmem:[%s1224_s1 + $0x390] sm:$0xff]  ;;  %v145_v48 = vld [vmem:[%s1224_s1 + $0x398] sm:$0xff]  ;;  %v695_v50 = vpack.c.bf16 %v95_v41, %v94_v40  ;;  %v697_v53 = vpack.c.bf16 %v113_v46, %v112_v45 }
  0x1b   :  { %684 = vmatpush3.bf16.msra.mxu1 %v683_v14  ;;  %v14_v49 = vld [vmem:[%s1225_s0] sm:$0xff]  ;;  %v16_v51 = vld [vmem:[%s1225_s0 + $0x10] sm:$0xff]  ;;  %v727_v52 = vpack.c.bf16 %v127_v44, %v126_v42  ;;  %v97_v55 = vld [vmem:[%s1224_s1 + $0x218] sm:$0xff]  ;;  %v729_v57 = vpack.c.bf16 %v145_v48, %v144_v47 }
  0x1c   :  { %686 = vmatprep.subr.bf16.mxu1 %v685_v19  ;;  %v96_v54 = vld [vmem:[%s1224_s1 + $0x210] sm:$0xff]  ;;  %v129_v58 = vld [vmem:[%s1224_s1 + $0x318] sm:$0xff]  ;;  %v114_v59 = vld [vmem:[%s1224_s1 + $0x2a0] sm:$0xff] }
  0x1d   :  { %656 = vmatpush3.bf16.msra.mxu0 %v655_v25  ;;  %v128_v56 = vld [vmem:[%s1224_s1 + $0x310] sm:$0xff]  ;;  %v115_v60 = vld [vmem:[%s1224_s1 + $0x2a8] sm:$0xff]  ;;  %v146_v61 = vld [vmem:[%s1224_s1 + $0x3a0] sm:$0xff]  ;;  %v699_v63 = vpack.c.bf16 %v97_v55, %v96_v54 }
  0x1e   :  { %658 = vmatprep.subr.bf16.mxu0 %v657_v27  ;;  %v147_v62 = vld [vmem:[%s1224_s1 + $0x3a8] sm:$0xff]  ;;  %v731_v0 = vpack.c.bf16 %v129_v58, %v128_v56  ;;  %v701_v1 = vpack.c.bf16 %v115_v60, %v114_v59  ;;  %v98_v2 = vld [vmem:[%s1224_s1 + $0x220] sm:$0xff]  ;;  %v116_v7 = vld [vmem:[%s1224_s1 + $0x2b0] sm:$0xff] }
  0x1f   :  { %688 = vmatpush3.bf16.msra.mxu1 %v687_v26  ;;  %v99_v3 = vld [vmem:[%s1224_s1 + $0x228] sm:$0xff]  ;;  %v130_v4 = vld [vmem:[%s1224_s1 + $0x320] sm:$0xff]  ;;  %v733_v5 = vpack.c.bf16 %v147_v62, %v146_v61  ;;  %v117_v8 = vld [vmem:[%s1224_s1 + $0x2b8] sm:$0xff] }
  0x20   :  { %690 = vmatprep.subr.bf16.mxu1 %v689_v31  ;;  %v131_v6 = vld [vmem:[%s1224_s1 + $0x328] sm:$0xff]  ;;  %v148_v9 = vld [vmem:[%s1224_s1 + $0x3b0] sm:$0xff]  ;;  %v149_v10 = vld [vmem:[%s1224_s1 + $0x3b8] sm:$0xff]  ;;  %v703_v11 = vpack.c.bf16 %v99_v3, %v98_v2  ;;  %v705_v16 = vpack.c.bf16 %v117_v8, %v116_v7 }
  0x21   :  { %660 = vmatpush3.bf16.msra.mxu0 %v659_v37  ;;  %v100_v12 = vld [vmem:[%s1224_s1 + $0x230] sm:$0xff]  ;;  %v101_v13 = vld [vmem:[%s1224_s1 + $0x238] sm:$0xff]  ;;  %v23_v14 = vld [vmem:[%s1225_s0 + $0x48] sm:$0xff]  ;;  %v735_v15 = vpack.c.bf16 %v131_v6, %v130_v4  ;;  %v737_v20 = vpack.c.bf16 %v149_v10, %v148_v9 }
  0x22   :  { %694 = vmatprep.subr.bf16.mxu0 %v693_v39  ;;  %v132_v17 = vld [vmem:[%s1224_s1 + $0x330] sm:$0xff]  ;;  %v133_v18 = vld [vmem:[%s1224_s1 + $0x338] sm:$0xff]  ;;  %v22_v19 = vld [vmem:[%s1225_s0 + $0x40] sm:$0xff]  ;;  %v707_v27 = vpack.c.bf16 %v101_v13, %v100_v12 }
  0x23   :  { %692 = vmatpush3.bf16.msra.mxu1 %v691_v38  ;;  %v118_v21 = vld [vmem:[%s1224_s1 + $0x2c0] sm:$0xff]  ;;  %v119_v22 = vld [vmem:[%s1224_s1 + $0x2c8] sm:$0xff]  ;;  %v25_v23 = vld [vmem:[%s1225_s0 + $0x58] sm:$0xff]  ;;  %v739_v30 = vpack.c.bf16 %v133_v18, %v132_v17 }
  0x24   :  { %726 = vmatprep.subr.bf16.mxu1 %v725_v43  ;;  %235 = vmatmul.mubr.f32.vlgmr.msra.gmra.mrb[0].mxu0 %v14_v49  ;;  %v150_v24 = vld [vmem:[%s1224_s1 + $0x3c0] sm:$0xff]  ;;  %v151_v25 = vld [vmem:[%s1224_s1 + $0x3c8] sm:$0xff]  ;;  %v24_v26 = vld [vmem:[%s1225_s0 + $0x50] sm:$0xff]  ;;  %v709_v31 = vpack.c.bf16 %v119_v22, %v118_v21 }
  0x25   :  { %696 = vmatpush3.bf16.msra.mxu0 %v695_v50  ;;  %239 = vmatprep.mubr.f32.mxu0 %v23_v14  ;;  %v102_v28 = vld [vmem:[%s1224_s1 + $0x240] sm:$0xff]  ;;  %v103_v29 = vld [vmem:[%s1224_s1 + $0x248] sm:$0xff]  ;;  %v741_v35 = vpack.c.bf16 %v151_v25, %v150_v24  ;;  %v120_v36 = vld [vmem:[%s1224_s1 + $0x2d0] sm:$0xff] }
  0x26   :  { %310 = vmatmul.mubr.f32.vlgmr.msra.gmra.mrb[0].mxu1 %v16_v51  ;;  %698 = vmatprep.subr.bf16.mxu0 %v697_v53  ;;  %v134_v32 = vld [vmem:[%s1224_s1 + $0x340] sm:$0xff]  ;;  %v135_v33 = vld [vmem:[%s1224_s1 + $0x348] sm:$0xff]  ;;  %v121_v37 = vld [vmem:[%s1224_s1 + $0x2d8] sm:$0xff]  ;;  %v711_v41 = vpack.c.bf16 %v103_v29, %v102_v28 }
  0x27   :  { %728 = vmatpush3.bf16.msra.mxu1 %v727_v52  ;;  %314 = vmatprep.mubr.f32.mxu1 %v25_v23  ;;  %v19_v34 = vld [vmem:[%s1225_s0 + $0x28] sm:$0xff]  ;;  %v21_v38 = vld [vmem:[%s1225_s0 + $0x38] sm:$0xff]  ;;  %v152_v39 = vld [vmem:[%s1224_s1 + $0x3d0] sm:$0xff]  ;;  %v743_v43 = vpack.c.bf16 %v135_v33, %v134_v32  ;;  %v713_v44 = vpack.c.bf16 %v121_v37, %v120_v36 }
  0x28   :  { %730 = vmatprep.subr.bf16.mxu1 %v729_v57  ;;  %240 = vmatmul.mubr.f32.gmra.mrb[2].mxu0 %v22_v19  ;;  %v153_v40 = vld [vmem:[%s1224_s1 + $0x3d8] sm:$0xff]  ;;  %v158_v42 = vld [vmem:[%s1226_s2] sm:$0xff]  ;;  %v104_v45 = vld [vmem:[%s1224_s1 + $0x250] sm:$0xff] }
  0x29   :  { %700 = vmatpush3.bf16.msra.mxu0 %v699_v63  ;;  %384 = vmatprep.mubr.f32.mxu0 %v19_v34  ;;  %v105_v46 = vld [vmem:[%s1224_s1 + $0x258] sm:$0xff]  ;;  %v136_v47 = vld [vmem:[%s1224_s1 + $0x350] sm:$0xff]  ;;  %v745_v48 = vpack.c.bf16 %v153_v40, %v152_v39  ;;  %v122_v50 = vld [vmem:[%s1224_s1 + $0x2e0] sm:$0xff] }
  0x2a   :  { %702 = vmatprep.subr.bf16.mxu0 %v701_v1  ;;  %315 = vmatmul.mubr.f32.gmra.mrb[2].mxu1 %v24_v26  ;;  %v137_v49 = vld [vmem:[%s1224_s1 + $0x358] sm:$0xff]  ;;  %v123_v51 = vld [vmem:[%s1224_s1 + $0x2e8] sm:$0xff]  ;;  %v154_v52 = vld [vmem:[%s1224_s1 + $0x3e0] sm:$0xff]  ;;  %v715_v55 = vpack.c.bf16 %v105_v46, %v104_v45 }
  0x2b   :  { %732 = vmatpush3.bf16.msra.mxu1 %v731_v0  ;;  %459 = vmatprep.mubr.f32.mxu1 %v21_v38  ;;  %v155_v53 = vld [vmem:[%s1224_s1 + $0x3e8] sm:$0xff]  ;;  %v747_v56 = vpack.c.bf16 %v137_v49, %v136_v47  ;;  %v717_v57 = vpack.c.bf16 %v123_v51, %v122_v50  ;;  %v106_v58 = vld [vmem:[%s1224_s1 + $0x260] sm:$0xff]  ;;  %v124_v63 = vld [vmem:[%s1224_s1 + $0x2f0] sm:$0xff] }
  0x2c   :  { %734 = vmatprep.subr.bf16.mxu1 %v733_v5  ;;  %162 = vperm.xlu0 %758, %v158_v42   ;;  %v159_v54 = vld [vmem:[%s1226_s2 + $0x8] sm:$0xff]  ;;  %v138_v60 = vld [vmem:[%s1224_s1 + $0x360] sm:$0xff]  ;;  %v749_v61 = vpack.c.bf16 %v155_v53, %v154_v52  ;;  %v125_v0 = vld [vmem:[%s1224_s1 + $0x2f8] sm:$0xff] }
  0x2d   :  { %704 = vmatpush3.bf16.msra.mxu0 %v703_v11  ;;  %v107_v59 = vld [vmem:[%s1224_s1 + $0x268] sm:$0xff]  ;;  %v156_v1 = vld [vmem:[%s1224_s1 + $0x3f0] sm:$0xff]  ;;  %v157_v2 = vld [vmem:[%s1224_s1 + $0x3f8] sm:$0xff]  ;;  %v721_v5 = vpack.c.bf16 %v125_v0, %v124_v63 }
  0x2e   :  { %706 = vmatprep.subr.bf16.mxu0 %v705_v16  ;;  %v139_v62 = vld [vmem:[%s1224_s1 + $0x368] sm:$0xff]  ;;  %v719_v3 = vpack.c.bf16 %v107_v59, %v106_v58  ;;  %v108_v6 = vld [vmem:[%s1224_s1 + $0x270] sm:$0xff]  ;;  %v109_v7 = vld [vmem:[%s1224_s1 + $0x278] sm:$0xff]  ;;  %v753_v8 = vpack.c.bf16 %v157_v2, %v156_v1 }
  0x2f   :  { %736 = vmatpush3.bf16.msra.mxu1 %v735_v15  ;;  %v751_v4 = vpack.c.bf16 %v139_v62, %v138_v60  ;;  %v140_v9 = vld [vmem:[%s1224_s1 + $0x370] sm:$0xff]  ;;  %v141_v10 = vld [vmem:[%s1224_s1 + $0x378] sm:$0xff]  ;;  %v723_v11 = vpack.c.bf16 %v109_v7, %v108_v6  ;;  %v18_v13 = vld [vmem:[%s1225_s0 + $0x20] sm:$0xff] }
  0x30   :  { %738 = vmatprep.subr.bf16.mxu1 %v737_v20  ;;  %167 = vperm.xlu0 %758, %v159_v54   ;;  %v755_v12 = vpack.c.bf16 %v141_v10, %v140_v9  ;;  %v20_v14 = vld [vmem:[%s1225_s0 + $0x30] sm:$0xff]  ;;  %v27_v15 = vld [vmem:[%s1225_s0 + $0x68] sm:$0xff]  ;;  %v29_v16 = vld [vmem:[%s1225_s0 + $0x78] sm:$0xff] }
  0x31   :  { %708 = vmatpush3.bf16.msra.mxu0 %v707_v27  ;;  %v26_v17 = vld [vmem:[%s1225_s0 + $0x60] sm:$0xff]  ;;  %v28_v18 = vld [vmem:[%s1225_s0 + $0x70] sm:$0xff] }
  0x32   :  { %710 = vmatprep.subr.bf16.mxu0 %v709_v31 }
  0x33   :  { %740 = vmatpush3.bf16.msra.mxu1 %v739_v30 }
  0x34   :  { %742 = vmatprep.subr.bf16.mxu1 %v741_v35 }
  0x35   :  { %712 = vmatpush3.bf16.msra.mxu0 %v711_v41 }
  0x36   :  { %714 = vmatprep.subr.bf16.mxu0 %v713_v44 }
  0x37   :  { %744 = vmatpush3.bf16.msra.mxu1 %v743_v43 }
  0x38   :  { %746 = vmatprep.subr.bf16.mxu1 %v745_v48 }
  0x39   :  { %716 = vmatpush3.bf16.msra.mxu0 %v715_v55 }
  0x3a   :  { %718 = vmatprep.subr.bf16.mxu0 %v717_v57 }
  0x3b   :  { %748 = vmatpush3.bf16.msra.mxu1 %v747_v56 }
  0x3c   :  { %750 = vmatprep.subr.bf16.mxu1 %v749_v61 }
  0x3d   :  { %720 = vmatpush3.bf16.msra.mxu0 %v719_v3 }
  0x3e   :  { %722 = vmatprep.subr.bf16.mxu0 %v721_v5 }
  0x3f   :  { %752 = vmatpush3.bf16.msra.mxu1 %v751_v4 }
  0x40   :  { %754 = vmatprep.subr.bf16.mxu1 %v753_v8 }
  0x41   :  { %724 = vmatpush3.bf16.msra.mxu0 %v723_v11 }
  0x43   :  { %756 = vmatpush3.bf16.msra.mxu1 %v755_v12 }
  0x44   :  { %385 = vmatmul.mubr.f32.vlgmr.msra.gmra.mrb[4].mxu0 %v18_v13 }
  0x45   :  { %389 = vmatprep.mubr.f32.mxu0 %v27_v15 }
  0x46   :  { %460 = vmatmul.mubr.f32.vlgmr.msra.gmra.mrb[4].mxu1 %v20_v14 }
  0x47   :  { %464 = vmatprep.mubr.f32.mxu1 %v29_v16 }
  0x48   :  { %390 = vmatmul.mubr.f32.gmra.mrb[6].mxu0 %v26_v17 }
  0x4a   :  { %465 = vmatmul.mubr.f32.gmra.mrb[6].mxu1 %v28_v18 }
  0xab   :  { %v163_v20 = vpop.permute.xlu0 %162 }
  0xaf   :  { %v168_v29 = vpop.permute.xlu0 %167 }
  0xf7   :  { %v509_v19 = vpop.f32.mrb[0].mxu0 }
  0xf8   :  { %v510_v21 = vpop.f32.mrb[1].mxu0 }
  0xf9   :  { %v547_v22 = vpop.f32.mrb[0].mxu1  ;;  %v511_v23 = vadd.f32 %v510_v21, %v509_v19 }
  0xfa   :  { %v548_v24 = vpop.f32.mrb[1].mxu1 }
  0xfb   :  { %v549_v25 = vadd.f32 %v548_v24, %v547_v22  ;;  %v237_v26 = vadd.f32 %v511_v23, %v163_v20  ;;  %v512_v28 = vpop.f32.mrb[2].mxu0 }
  0xfc   :  { %v513_v30 = vpop.f32.mrb[3].mxu0 }
  0xfd   :  { %v312_v27 = vadd.f32 %v549_v25, %v237_v26  ;;  %v550_v31 = vpop.f32.mrb[2].mxu1  ;;  %v514_v32 = vadd.f32 %v513_v30, %v512_v28 }
  0xfe   :  { %v551_v33 = vpop.f32.mrb[3].mxu1 }
  0xff   :  { %v552_v34 = vadd.f32 %v551_v33, %v550_v31  ;;  %v242_v35 = vadd.f32 %v514_v32, %v168_v29 }
 0x101   :  { %v317_v36 = vadd.f32 %v552_v34, %v242_v35 }
 0x117   :  { %v585_v37 = vpop.f32.mrb[4].mxu0 }
 0x118   :  { %v586_v38 = vpop.f32.mrb[5].mxu0 }
 0x119   :  { %v623_v39 = vpop.f32.mrb[4].mxu1  ;;  %v587_v40 = vadd.f32 %v586_v38, %v585_v37 }
 0x11a   :  { %v624_v41 = vpop.f32.mrb[5].mxu1 }
 0x11b   :  { %v625_v42 = vadd.f32 %v624_v41, %v623_v39  ;;  %v387_v43 = vadd.f32 %v587_v40, %v312_v27  ;;  %v588_v44 = vpop.f32.mrb[6].mxu0 }
 0x11c   :  { %v589_v45 = vpop.f32.mrb[7].mxu0 }
 0x11d   :  { %v626_v46 = vpop.f32.mrb[6].mxu1  ;;  %v462_v47 = vadd.f32 %v625_v42, %v387_v43  ;;  %v590_v48 = vadd.f32 %v589_v45, %v588_v44 }
 0x11e   :  { %v627_v49 = vpop.f32.mrb[7].mxu1 }
 0x11f   :  { %v628_v50 = vadd.f32 %v627_v49, %v626_v46  ;;  %471 = vst.msk [vmem:[%s1227_s3] sm:$0xff] %vm470_vm0, %v462_v47  ;;  %v392_v51 = vadd.f32 %v590_v48, %v317_v36 }
 0x121   :  { %v467_v52 = vadd.f32 %v628_v50, %v392_v51 }
 0x123   :  { %472 = vst.msk [vmem:[%s1227_s3 + $0x8] sm:$0xff] %vm470_vm0, %v467_v52 }

</bundles_post_ra>
